<compile_context>
chip_gen: v7x
topology: tpu7x:2x2x1
jax: 0.10.0
libtpu: 0.0.40
codegen_flags: <defaults>
</compile_context>

<pallas_src>
import jax
import jax.numpy as jnp
from jax.experimental import pallas as pl
from jax.experimental.pallas import tpu as pltpu


def _ffn_kernel(x_ref, w1_ref, w2_ref, wo_ref, o_ref, acc_ref):
    """One (row-tile i, intermediate-tile j) step of the SwiGLU FFN.

    x_ref  : (tm, H)  input rows
    w1_ref : (H, tf)  gate-proj slice
    w2_ref : (H, tf)  up-proj slice
    wo_ref : (tf, H)  down-proj slice
    o_ref  : (tm, H)  output rows (written on last j)
    acc_ref: (tm, H)  f32 accumulator scratch (resident across j)
    """
    j = pl.program_id(1)

    @pl.when(j == 0)
    def _():
        acc_ref[...] = jnp.zeros_like(acc_ref)

    x = x_ref[...]
    a = jnp.dot(x, w1_ref[...], preferred_element_type=jnp.float32)
    b = jnp.dot(x, w2_ref[...], preferred_element_type=jnp.float32)
    # silu(a) * b, computed in f32 (exp goes to the EUP slot).
    h = (a * (1.0 / (1.0 + jnp.exp(-a)))) * b
    acc_ref[...] += jnp.dot(h.astype(wo_ref.dtype), wo_ref[...],
                            preferred_element_type=jnp.float32)

    @pl.when(j == pl.num_programs(1) - 1)
    def _():
        o_ref[...] = acc_ref[...].astype(o_ref.dtype)


def _round_up(x, m):
    return (x + m - 1) // m * m


def _choose_tiles(R, H, F, x_bytes, w_bytes, out_bytes,
                  vmem_budget_bytes=48 << 20):
    """Pick (tm, tf) so double-buffered tiles stay inside the VMEM budget."""
    # Intermediate tile: lane-dense multiple of 128 that divides F (else full F).
    tf = F
    if F % 128 == 0:
        for cand in (512, 384, 256, 128):
            if F % cand == 0:
                tf = cand
                break

    # Double-buffered weight slices (w1 + w2 + wo) per step.
    weight_bytes = (2 * H * tf + tf * H) * w_bytes * 2

    def usage(tm):
        x_b = tm * H * x_bytes * 2          # double-buffered input tile
        o_b = tm * H * out_bytes * 2        # double-buffered output tile
        acc = tm * H * 4                    # f32 accumulator scratch
        return weight_bytes + x_b + o_b + acc

    tm = 8
    for cand in (1024, 512, 256, 128, 64, 32, 16, 8):
        if usage(cand) <= vmem_budget_bytes:
            tm = cand
            break

    # Never pick a row tile wider than the (8-rounded) row count, and keep it
    # a multiple of 8 so the (8, 128) block constraint always holds.
    tm = min(tm, max(8, _round_up(R, 8)))
    tm = max(8, (tm // 8) * 8)
    return tm, tf


def llama_feedforward(x, w1, w2, wo):
    """SwiGLU feed-forward: (silu(x @ w1) * (x @ w2)) @ wo.

    x : (..., H)
    w1: (H, F)  == torch `self.w1.weight.T`
    w2: (H, F)  == torch `self.w2.weight.T`
    wo: (F, H)  == torch `self.wo.weight.T`
    Returns an array of the same shape/dtype as x.
    """
    orig_shape = x.shape
    H = orig_shape[-1]
    F = w1.shape[1]
    assert w1.shape == (H, F) and w2.shape == (H, F) and wo.shape == (F, H)

    x2d = x.reshape(-1, H)
    R = x2d.shape[0]

    x_bytes = x2d.dtype.itemsize
    w_bytes = w1.dtype.itemsize
    out_dtype = x.dtype
    out_bytes = jnp.dtype(out_dtype).itemsize

    tm, tf = _choose_tiles(R, H, F, x_bytes, w_bytes, out_bytes)

    # Pad rows to a multiple of the row tile (never collapse the grid to one
    # giant block); padded rows are zeros and are sliced off afterwards.
    R_pad = _round_up(R, tm)
    if R_pad != R:
        x2d = jnp.pad(x2d, ((0, R_pad - R), (0, 0)))

    grid = (R_pad // tm, F // tf)

    # Note: for hidden sizes that are not multiples of 128 (e.g. the config
    # default H=1200) the full-H blocks still compile; padding H to the next
    # multiple of 128 in the caller would keep stores fully lane-dense.
    cost = pl.CostEstimate(
        flops=6 * R_pad * H * F,
        transcendentals=R_pad * F,
        bytes_accessed=(R_pad * H * (x_bytes + out_bytes)
                        + 3 * H * F * w_bytes * grid[0]),
    )

    out = pl.pallas_call(
        _ffn_kernel,
        out_shape=jax.ShapeDtypeStruct((R_pad, H), out_dtype),
        grid_spec=pltpu.PrefetchScalarGridSpec(
            num_scalar_prefetch=0,
            grid=grid,
            in_specs=[
                pl.BlockSpec((tm, H), lambda i, j: (i, 0)),   # x rows
                pl.BlockSpec((H, tf), lambda i, j: (0, j)),   # W1 slice
                pl.BlockSpec((H, tf), lambda i, j: (0, j)),   # W2 slice
                pl.BlockSpec((tf, H), lambda i, j: (j, 0)),   # Wo slice
            ],
            out_specs=pl.BlockSpec((tm, H), lambda i, j: (i, 0)),
            scratch_shapes=[pltpu.VMEM((tm, H), jnp.float32)],
        ),
        compiler_params=pltpu.CompilerParams(
            dimension_semantics=("parallel", "arbitrary"),
            vmem_limit_bytes=64 << 20,
        ),
        cost_estimate=cost,
    )(x2d, w1, w2, wo)

    if R_pad != R:
        out = out[:R]
    return out.reshape(orig_shape)


def ffn_ref(x, w1, w2, wo):
    a = jnp.dot(x, w1)
    b = jnp.dot(x, w2)
    return jnp.dot(jax.nn.silu(a) * b, wo)


if __name__ == "__main__":
    # Small config consistent with the module: hidden on the last axis,
    # intermediate = 4 * hidden.
    batch, seq, hidden = 2, 8, 256
    inter = 4 * hidden

    key = jax.random.PRNGKey(0)
    kx, k1, k2, k3 = jax.random.split(key, 4)
    x = jax.random.normal(kx, (batch, seq, hidden), dtype=jnp.float32)
    # Weights in (in_features, out_features) layout == torch weight.T,
    # scaled like nn.Linear init so activations stay O(1).
    w1 = jax.random.normal(k1, (hidden, inter), dtype=jnp.float32) / jnp.sqrt(hidden)
    w2 = jax.random.normal(k2, (hidden, inter), dtype=jnp.float32) / jnp.sqrt(hidden)
    wo = jax.random.normal(k3, (inter, hidden), dtype=jnp.float32) / jnp.sqrt(inter)

    y = llama_feedforward(x, w1, w2, wo)
    y = jax.block_until_ready(y)

    y_ref = ffn_ref(x, w1, w2, wo)
    assert y.shape == x.shape and y.dtype == x.dtype
    max_err = float(jnp.max(jnp.abs(y - y_ref)))
    assert jnp.allclose(y, y_ref, atol=2e-2, rtol=2e-2), max_err

    print("KERNEL_OK")
</pallas_src>

<mosaic_0001>
module attributes {stable_mosaic.version = 11 : i64} {
  func.func @_ffn_kernel(%arg0: i32, %arg1: i32, %arg2: memref<16x256xf32, #tpu.memory_space<vmem>>, %arg3: memref<256x512xf32, #tpu.memory_space<vmem>>, %arg4: memref<256x512xf32, #tpu.memory_space<vmem>>, %arg5: memref<512x256xf32, #tpu.memory_space<vmem>>, %arg6: memref<16x256xf32, #tpu.memory_space<vmem>>, %arg7: memref<16x256xf32, #tpu.memory_space<vmem>>) attributes {dimension_semantics = [#tpu.dimension_semantics<parallel>, #tpu.dimension_semantics<arbitrary>], iteration_bounds = array<i64: 1, 2>, scalar_prefetch = 0 : i64, scratch_operands = 1 : i64, tpu.core_type = #tpu.core_type<tc>, window_params = [{transform_indices = @transform_0, window_bounds = array<i64: 16, 256>}, {transform_indices = @transform_1, window_bounds = array<i64: 256, 512>}, {transform_indices = @transform_2, window_bounds = array<i64: 256, 512>}, {transform_indices = @transform_3, window_bounds = array<i64: 512, 256>}, {transform_indices = @transform_4, window_bounds = array<i64: 16, 256>}]} {
    %c0_i32 = arith.constant 0 : i32
    %0 = arith.cmpi eq, %arg1, %c0_i32 : i32
    %1 = arith.extui %0 : i1 to i32
    %c0_i32_0 = arith.constant 0 : i32
    %2 = arith.cmpi ne, %1, %c0_i32_0 : i32
    scf.if %2 {
      %cst_18 = arith.constant 0.000000e+00 : f32
      %25 = vector.broadcast %cst_18 : f32 to vector<16x256xf32>
      %c0_19 = arith.constant 0 : index
      %c0_20 = arith.constant 0 : index
      %26 = vector.load %arg7[%c0_19, %c0_20] : memref<16x256xf32, #tpu.memory_space<vmem>>, vector<16x256xf32>
      tpu.vector_store %arg7[%c0_19, %c0_20], %25 {strides = array<i32>} : memref<16x256xf32, #tpu.memory_space<vmem>>, vector<16x256xf32>,
    } else {
    }
    %c0 = arith.constant 0 : index
    %c0_1 = arith.constant 0 : index
    %3 = vector.load %arg2[%c0, %c0_1] : memref<16x256xf32, #tpu.memory_space<vmem>>, vector<16x256xf32>
    %c0_2 = arith.constant 0 : index
    %c0_3 = arith.constant 0 : index
    %4 = vector.load %arg3[%c0_2, %c0_3] : memref<256x512xf32, #tpu.memory_space<vmem>>, vector<256x512xf32>
    %cst = arith.constant dense<0.000000e+00> : vector<16x512xf32>
    %5 = tpu.matmul %3, %4, %cst {dimension_numbers = #tpu.dot_dimension_numbers<[1], [0], [0], [1], [0, 0, 1, 1], [], []>} : vector<16x256xf32>, vector<256x512xf32>, vector<16x512xf32> -> vector<16x512xf32>
    %c0_4 = arith.constant 0 : index
    %c0_5 = arith.constant 0 : index
    %6 = vector.load %arg4[%c0_4, %c0_5] : memref<256x512xf32, #tpu.memory_space<vmem>>, vector<256x512xf32>
    %cst_6 = arith.constant dense<0.000000e+00> : vector<16x512xf32>
    %7 = tpu.matmul %3, %6, %cst_6 {dimension_numbers = #tpu.dot_dimension_numbers<[1], [0], [0], [1], [0, 0, 1, 1], [], []>} : vector<16x256xf32>, vector<256x512xf32>, vector<16x512xf32> -> vector<16x512xf32>
    %cst_7 = arith.constant 0.000000e+00 : f32
    %8 = vector.broadcast %cst_7 : f32 to vector<16x512xf32>
    %9 = arith.subf %8, %5 : vector<16x512xf32>
    %10 = math.exp %9 : vector<16x512xf32>
    %cst_8 = arith.constant 1.000000e+00 : f32
    %11 = vector.broadcast %cst_8 : f32 to vector<16x512xf32>
    %12 = arith.addf %11, %10 : vector<16x512xf32>
    %cst_9 = arith.constant 1.000000e+00 : f32
    %13 = vector.broadcast %cst_9 : f32 to vector<16x512xf32>
    %14 = arith.divf %13, %12 : vector<16x512xf32>
    %15 = arith.mulf %5, %14 : vector<16x512xf32>
    %16 = arith.mulf %15, %7 : vector<16x512xf32>
    %c0_10 = arith.constant 0 : index
    %c0_11 = arith.constant 0 : index
    %17 = vector.load %arg7[%c0_10, %c0_11] : memref<16x256xf32, #tpu.memory_space<vmem>>, vector<16x256xf32>
    %c0_12 = arith.constant 0 : index
    %c0_13 = arith.constant 0 : index
    %18 = vector.load %arg5[%c0_12, %c0_13] : memref<512x256xf32, #tpu.memory_space<vmem>>, vector<512x256xf32>
    %cst_14 = arith.constant dense<0.000000e+00> : vector<16x256xf32>
    %19 = tpu.matmul %16, %18, %cst_14 {dimension_numbers = #tpu.dot_dimension_numbers<[1], [0], [0], [1], [0, 0, 1, 1], [], []>} : vector<16x512xf32>, vector<512x256xf32>, vector<16x256xf32> -> vector<16x256xf32>
    %20 = arith.addf %17, %19 : vector<16x256xf32>
    %c0_15 = arith.constant 0 : index
    %c0_16 = arith.constant 0 : index
    %21 = vector.load %arg7[%c0_15, %c0_16] : memref<16x256xf32, #tpu.memory_space<vmem>>, vector<16x256xf32>
    tpu.vector_store %arg7[%c0_15, %c0_16], %20 {strides = array<i32>} : memref<16x256xf32, #tpu.memory_space<vmem>>, vector<16x256xf32>,
    %c1_i32 = arith.constant 1 : i32
    %22 = arith.cmpi eq, %arg1, %c1_i32 : i32
    %23 = arith.extui %22 : i1 to i32
    %c0_i32_17 = arith.constant 0 : i32
    %24 = arith.cmpi ne, %23, %c0_i32_17 : i32
    scf.if %24 {
      %c0_18 = arith.constant 0 : index
      %c0_19 = arith.constant 0 : index
      %25 = vector.load %arg7[%c0_18, %c0_19] : memref<16x256xf32, #tpu.memory_space<vmem>>, vector<16x256xf32>
      %c0_20 = arith.constant 0 : index
      %c0_21 = arith.constant 0 : index
      %26 = vector.load %arg6[%c0_20, %c0_21] : memref<16x256xf32, #tpu.memory_space<vmem>>, vector<16x256xf32>
      tpu.vector_store %arg6[%c0_20, %c0_21], %25 {strides = array<i32>} : memref<16x256xf32, #tpu.memory_space<vmem>>, vector<16x256xf32>,
    } else {
    }
    return
  }
  func.func @transform_0(%arg0: i32, %arg1: i32) -> (i32, i32) {
    %c0_i32 = arith.constant 0 : i32
    %c0_i32_0 = arith.constant 0 : i32
    return %arg0, %c0_i32 : i32, i32
  }
  func.func @transform_1(%arg0: i32, %arg1: i32) -> (i32, i32) {
    %c0_i32 = arith.constant 0 : i32
    %c0_i32_0 = arith.constant 0 : i32
    return %c0_i32, %arg1 : i32, i32
  }
  func.func @transform_2(%arg0: i32, %arg1: i32) -> (i32, i32) {
    %c0_i32 = arith.constant 0 : i32
    %c0_i32_0 = arith.constant 0 : i32
    return %c0_i32, %arg1 : i32, i32
  }
  func.func @transform_3(%arg0: i32, %arg1: i32) -> (i32, i32) {
    %c0_i32 = arith.constant 0 : i32
    %c0_i32_0 = arith.constant 0 : i32
    return %arg1, %c0_i32 : i32, i32
  }
  func.func @transform_4(%arg0: i32, %arg1: i32) -> (i32, i32) {
    %c0_i32 = arith.constant 0 : i32
    %c0_i32_0 = arith.constant 0 : i32
    return %arg0, %c0_i32 : i32, i32
  }
}

</mosaic_0001>

<bundles_post_ra>
// kernel: tpu_custom_call.1
= control target key start
LH: loop header
LB: loop body
LE: loop exit
PB: predicated region body
PF: predicated region fallthrough
CT: control target
= control target key end

     0   :  { %s2895_s0 = inlined_call_operand.hbm [shape: f32[16,256], index: 0, kind: input, shape index: {}]   ;;  %s2896_s1 = inlined_call_operand.hbm [shape: f32[256,1024], index: 1, kind: input, shape index: {}]   ;;  %s2897_s2 = inlined_call_operand.hbm [shape: f32[256,1024], index: 2, kind: input, shape index: {}]   ;;  %s2898_s3 = inlined_call_operand.hbm [shape: f32[1024,256], index: 3, kind: input, shape index: {}]   ;;  %s2899_s4 = inlined_call_operand.hbm [shape: f32[16,256], index: 4, kind: output, shape index: {}]  }
   0x1   :  { %2914 = sst [smem:[#allocation17_spill]] %s2896_s1 }
   0x2   :  { %9 = vsyncpa [#allocation4], 0 }
   0x3   :  { %10 = vsyncpa [#allocation7], 0 }
   0x4   :  { %12 = vsyncpa [#allocation7 + $0x1], 0 }
   0x5   :  { %13 = vsyncpa [#allocation10], 0 }
   0x6   :  { %15 = vsyncpa [#allocation10 + $0x1], 0 }
   0x7   :  { %16 = vsyncpa [#allocation5], 0  ;;  %s2191_s15 = smov 0   ;;  %s2193_s16 = smov 0  }
   0x8   :  { %s2195_s17 = smov 0   ;;  %s2197_s18 = smov 0  }
   0x9   :  { %s2199_s19 = smov 0   ;;  %s2201_s20 = smov 0  }
   0xa LB: > { %s31_s21 = sadd.s32 1, %s2147_s19  ;;  %s67_s22 = sadd.s32 1, %s2139_s17  ;;  %s2151_s20 = sphi %s2201_s20, %s22_s20   ;;  %s2147_s19 = sphi %s2199_s19, %s2939_s19   ;;  %s2143_s18 = sphi %s2197_s18, %s2938_s18   ;;  %s2139_s17 = sphi %s2195_s17, %s2937_s17   ;;  %s2135_s16 = sphi %s2193_s16, %s2936_s16   ;;  %s2131_s15 = sphi %s2191_s15, %s2935_s15  }
   0xb   : > { %p32_p0 = scmp.ge.s32.totalorder %s31_s21, 2  ;;  %p74_p1 = scmp.ne.s32.totalorder %s2139_s17, %s2135_s16 }
   0xc   : > { %p75_p2 = scmp.eq.s32.totalorder %s2151_s20, 0  ;;  %p1851_p4 = scmp.lt.s32.totalorder %s2151_s20, 2 }
   0xd   : > { %s2941_s21 = smov (%p32_p0, %s31_s21), 0  ;;  %s199_s24 = sand.u32 1, %s2151_s20  }
   0xe   : > { %2915 = sst [smem:[#allocation16_spill]] %s2941_s21  ;;  %p76_p3 = por %p75_p2, %p74_p1 }
   0xf   : > { %s64_s23 = ssub.s32 %s2147_s19, %s2941_s21  ;;  %s2900_s25 = sand.u32 1, %s2139_s17  }
  0x10   : > { %p65_p5 = scmp.eq.s32.totalorder %s64_s23, 0  ;;  %s1430_s26 = sshll.u32 %s2147_s19, 9 }
  0x11   : > { %s2239_s28 = sshll.u32 %s2900_s25, 10  ;;  %s2916_s1 = sld [smem:[#allocation17_spill]] }
  0x12   : > { %s2235_s27 = scalar_select %p65_p5, %s2139_s17, %s67_s22  }
  0x13   : > { %p2248_p6 = pnand %p1851_p4, %p76_p3  ;;  %s203_s7 = scalar_lea.vmem [#allocation6], %s2239_s28 }
  0x14   : > { %s210_s8 = sshll.u32 %s203_s7, 4  ;;  %s2255_s9 = scalar_lea.sflag [#allocation7], %s199_s24  ;;  %s2253_s8 = int_to_ptr.vmem [resolvable:$true] %s210_s8 }
  0x15   : > { %s2917_s6 = scalar_select %p2248_p6, 1, 0 }
  0x16   : > { %p2261_p8 = pneg %p2248_p6 }
  0x17   : > { %s2246_s5 = scalar_lea.hbm %s2916_s1, %s1430_s26  ;;  %s1950_s14 = scalar_lea.hbm %s2916_s1, 32768 }
  0x18   : > { %s1945_s10 = scalar_lea.hbm %s2246_s5, 16384  ;;  %p1951_p11 = scmp.lt.u32.totalorder %s2246_s5, %s2916_s1 }
  0x19   : > { %p1946_p7 = scmp.ne.s32.totalorder %s2246_s5, %s1945_s10  ;;  %p1952_p12 = scmp.lt.u32.totalorder %s1950_s14, %s1945_s10 }
  0x1a   : > { %s2918_s11 = scalar_select %p2261_p8, 1, 0 }
  0x1b   : > { %p1948_p9 = pnand %p2261_p8, %p1946_p7  ;;  %p1953_p13 = por %p1952_p12, %p1951_p11 }
  0x1c   : > { %p1954_p0 = scmp.lt.u32.totalorder %s1945_s10, %s2246_s5 }
  0x1d   : > { %p1949_p10 = pneg %p1948_p9 }
  0x1e   : > { %p1955_p1 = por %p1954_p0, %p1953_p13 }
  0x20   : > { %p1956_p2 = pnand %p1955_p1, %p1949_p10 }
  0x22   : > { %1959 = shalt.err (!%p1956_p2)
}
  0x23   : > { %s1960_s24 = scalar_lea.vmem %s2253_s8, 16384  ;;  %s2153_s29 = smov [#allocation6]  }
  0x24   : > { %p1961_p3 = scmp.ne.s32.totalorder %s2253_s8, %s1960_s24  ;;  %s1965_s30 = sshll.u32 %s2153_s29, 4  ;;  %s1966_s30 = int_to_ptr.vmem [resolvable:$false] %s1965_s30 }
  0x25   : > { %s1967_s7 = scalar_lea.vmem %s1966_s30, 32768  ;;  %p1968_p7 = scmp.lt.s32.totalorder %s2253_s8, %s1966_s30 }
  0x26   : > { %p1963_p4 = pnand %p1961_p3, %p2261_p8  ;;  %p1969_p9 = scmp.lt.s32.totalorder %s1967_s7, %s1960_s24 }
  0x28   : > { %p1964_p5 = pneg %p1963_p4  ;;  %p1970_p11 = por %p1969_p9, %p1968_p7 }
  0x2a   : > { %p1971_p12 = pnand %p1970_p11, %p1964_p5 }
  0x2c   : > { %1974 = shalt.err (!%p1971_p12)
}
  0x2d   : > { %s2901_s10 = smov 1024   ;;  %s2902_s12 = smov 512  }
  0x2e   : > { %s2903_s13 = smov 32   ;;  %s2293_s23 = scalar_lea.hbm %s2897_s2, %s1430_s26 }
  0x2f   : > { %1843 = dma.hbm_to_vmem [thread:$0]  (!%p2248_p6), %s2246_s5, 16384, %s2253_s8, %s2255_s9, %s2901_s10, %s2902_s12, %s2903_s13  }
  0x30   : > { %s2296_s24 = sadd.s32 4294967295, %s2151_s20   ;;  %p80_p10 = scmp.ne.s32.totalorder %s2135_s16, %s2131_s15 }
  0x31   : > { %p2904_p13 = scmp.eq.s32.totalorder %s2296_s24, 0  ;;  %p1406_p0 = scmp.ge.s32.totalorder %s2151_s20, 1 }
  0x32   : > { %p169_p1 = scmp.lt.s32.totalorder %s2151_s20, 3  ;;  %s2157_s26 = smov [#allocation3]  }
  0x33   : > { %p2305_p2 = por %p2904_p13, %p80_p10  ;;  %s185_s8 = sshll.u32 %s2157_s26, 4  ;;  %s186_s8 = int_to_ptr.vmem [resolvable:$true] %s185_s8 }
  0x34   : > { %p2309_p3 = pnand %p1406_p0, %p169_p1  ;;  %s224_s30 = scalar_lea.vmem [#allocation8], %s2239_s28 }
  0x35   : > { %s2919_s29 = scalar_select %p2305_p2, 1, 0 }
  0x36   : > { %s2920_s5 = scalar_select %p2309_p3, 1, 0 }
  0x37   : > { %p1836_p4 = pneg %p2309_p3  ;;  %s231_s7 = sshll.u32 %s224_s30, 4  ;;  %s2322_s7 = int_to_ptr.vmem [resolvable:$true] %s231_s7 }
  0x38   : > { %s1975_s25 = scalar_lea.hbm %s2895_s0, 512 }
  0x39   : > { %p2317_p5 = pnand %p1836_p4, %p2904_p13  ;;  %p1976_p7 = scmp.ne.s32.totalorder %s2895_s0, %s1975_s25 }
  0x3a   : > { %p1982_p10 = scmp.lt.u32.totalorder %s1975_s25, %s2895_s0 }
  0x3b   : > { %p1977_p9 = pneg %p2317_p5 }
  0x3d   : > { %p1978_p11 = pnand %p1977_p9, %p1976_p7 }
  0x3f   : > { %p1979_p12 = pneg %p1978_p11 }
  0x41   : > { %p1984_p0 = pnand %p1982_p10, %p1979_p12 }
  0x43   : > { %1987 = shalt.err (!%p1984_p0)
}
  0x44   : > { %s1988_s30 = scalar_lea.vmem %s186_s8, 512  ;;  %p1996_p2 = scmp.lt.s32.totalorder %s186_s8, %s186_s8 }
  0x45   : > { %p1989_p1 = scmp.ne.s32.totalorder %s186_s8, %s1988_s30  ;;  %p1997_p3 = scmp.lt.s32.totalorder %s1988_s30, %s1988_s30 }
  0x47   : > { %p1991_p4 = pnand %p1989_p1, %p1977_p9  ;;  %p1998_p6 = por %p1997_p3, %p1996_p2 }
  0x49   : > { %p1992_p13 = pneg %p1991_p4 }
  0x4b   : > { %p1999_p8 = pnand %p1998_p6, %p1992_p13 }
  0x4d   : > { %2002 = shalt.err (!%p1999_p8)
}
  0x4e   : > { %s2912_s10 = smov 256   ;;  %s2913_s12 = smov 16  }
  0x4f   : > { %1839 = dma.hbm_to_vmem [thread:$0]  (!%p2317_p5), %s2895_s0, 512, %s186_s8, [#allocation4], %s2912_s10, %s2912_s10, %s2913_s12  }
  0x50   : > { %s2003_s14 = scalar_lea.hbm %s2293_s23, 16384  ;;  %p2922_p6 = scmp.ne.s32.totalorder %s2918_s11, 0 }
  0x51   : > { %p2004_p2 = scmp.ne.s32.totalorder %s2293_s23, %s2003_s14  ;;  %s2008_s30 = scalar_lea.hbm %s2897_s2, 32768 }
  0x52   : > { %p2009_p3 = scmp.lt.u32.totalorder %s2293_s23, %s2897_s2  ;;  %p2010_p7 = scmp.lt.u32.totalorder %s2008_s30, %s2003_s14 }
  0x53   : > { %p2006_p8 = pnand %p2004_p2, %p2922_p6  ;;  %p2012_p11 = scmp.lt.u32.totalorder %s2003_s14, %s2293_s23 }
  0x54   : > { %p2011_p9 = por %p2010_p7, %p2009_p3 }
  0x55   : > { %p2007_p13 = pneg %p2006_p8 }
  0x56   : > { %p2013_p12 = por %p2012_p11, %p2011_p9 }
  0x58   : > { %p2014_p10 = pnand %p2013_p12, %p2007_p13 }
  0x5a   : > { %2017 = shalt.err (!%p2014_p10)
}
  0x5b   : > { %s2018_s8 = scalar_lea.vmem %s2322_s7, 16384  ;;  %s2160_s15 = smov [#allocation8]  }
  0x5c   : > { %p2019_p5 = scmp.ne.s32.totalorder %s2322_s7, %s2018_s8  ;;  %s2023_s25 = sshll.u32 %s2160_s15, 4  ;;  %s2024_s25 = int_to_ptr.vmem [resolvable:$false] %s2023_s25 }
  0x5d   : > { %s2025_s1 = scalar_lea.vmem %s2024_s25, 32768  ;;  %p2026_p4 = scmp.lt.s32.totalorder %s2322_s7, %s2024_s25 }
  0x5e   : > { %p2021_p0 = pnand %p2019_p5, %p2922_p6  ;;  %p2027_p2 = scmp.lt.s32.totalorder %s2025_s1, %s2018_s8 }
  0x60   : > { %p2022_p1 = pneg %p2021_p0  ;;  %p2028_p8 = por %p2027_p2, %p2026_p4 }
  0x62   : > { %p2029_p3 = pnand %p2028_p8, %p2022_p1 }
  0x64   : > { %2032 = shalt.err (!%p2029_p3)
}
  0x65   : > { %p2923_p13 = scmp.ne.s32.totalorder %s2917_s6, 0  ;;  %s2924_s21 = smov 32  }
  0x66   : > { %s2925_s13 = smov 512   ;;  %s2926_s14 = smov 1024  }
  0x67   : > { %1846 = dma.hbm_to_vmem [thread:$0]  (!%p2923_p13), %s2293_s23, 16384, %s2322_s7, %s2255_s9, %s2926_s14, %s2925_s13, %s2924_s21  }
  0x68   : > { %s1433_s22 = sshll.u32 %s2147_s19, 14  ;;  %s245_s26 = scalar_lea.vmem [#allocation9], %s2239_s28 }
  0x69   : > { %s253_s30 = sshll.u32 %s245_s26, 4  ;;  %s2373_s25 = scalar_lea.hbm %s2898_s3, %s1433_s22  ;;  %s2375_s30 = int_to_ptr.vmem [resolvable:$true] %s253_s30 }
  0x6a   : > { %s2927_s1 = sand.u32 1, %s2139_s17   ;;  %s2033_s12 = scalar_lea.hbm %s2373_s25, 16384 }
  0x6b   : > { %s2379_s10 = scalar_lea.sflag [#allocation10], %s2927_s1  ;;  %p2034_p7 = scmp.ne.s32.totalorder %s2373_s25, %s2033_s12 }
  0x6c   : > { %s2038_s23 = scalar_lea.hbm %s2898_s3, 32768  ;;  %p2039_p12 = scmp.lt.u32.totalorder %s2373_s25, %s2898_s3 }
  0x6d   : > { %p2036_p9 = pnand %p2034_p7, %p2922_p6  ;;  %p2040_p10 = scmp.lt.u32.totalorder %s2038_s23, %s2033_s12 }
  0x6e   : > { %p2042_p0 = scmp.lt.u32.totalorder %s2033_s12, %s2373_s25 }
  0x6f   : > { %p2037_p11 = pneg %p2036_p9  ;;  %p2041_p5 = por %p2040_p10, %p2039_p12 }
  0x71   : > { %p2043_p1 = por %p2042_p0, %p2041_p5 }
  0x73   : > { %p2044_p4 = pnand %p2043_p1, %p2037_p11 }
  0x75   : > { %2047 = shalt.err (!%p2044_p4)
}
  0x76   : > { %s2048_s13 = scalar_lea.vmem %s2375_s30, 16384  ;;  %s2161_s14 = smov [#allocation9]  }
  0x77   : > { %p2049_p2 = scmp.ne.s32.totalorder %s2375_s30, %s2048_s13  ;;  %s2053_s22 = sshll.u32 %s2161_s14, 4  ;;  %s2054_s22 = int_to_ptr.vmem [resolvable:$false] %s2053_s22 }
  0x78   : > { %s2055_s26 = scalar_lea.vmem %s2054_s22, 32768  ;;  %p2056_p7 = scmp.lt.s32.totalorder %s2375_s30, %s2054_s22 }
  0x79   : > { %p2051_p8 = pnand %p2049_p2, %p2922_p6  ;;  %p2057_p9 = scmp.lt.s32.totalorder %s2055_s26, %s2048_s13 }
  0x7b   : > { %p2052_p3 = pneg %p2051_p8  ;;  %p2058_p12 = por %p2057_p9, %p2056_p7 }
  0x7d   : > { %p2059_p10 = pnand %p2058_p12, %p2052_p3 }
  0x7f   : > { %2062 = shalt.err (!%p2059_p10)
}
  0x80   : > { %s2928_s12 = smov 16   ;;  %s2929_s8 = smov 256  }
  0x81   : > { %1849 = dma.hbm_to_vmem [thread:$0]  (!%p2923_p13), %s2373_s25, 16384, %s2375_s30, %s2379_s10, %s2929_s8, %s2929_s8, %s2928_s12  }
  0x82   : > { %p2930_p6 = scmp.ne.s32.totalorder %s2920_s5, 0 }
  0x83   : > { %p2931_p11 = scmp.eq.s32.totalorder (!%p2930_p6), %s2296_s24, 0 }
  0x84   : > { %265 = sbr.rel (%p2930_p6) target bundleno = 823 (0x337), region = 36 }
  0x8b   : > { %2114 = dma.done.wait (%p2931_p11), [#allocation4], 512   ;;  %p2932_p5 = pmov %p2931_p11 }
  0x8c   : > { %s271_s6 = sand.u32 1, %s2296_s24   ;;  %s273_s11 = sand.u32 1, %s2135_s16  }
  0x8d   : > { %2116 = vsyncadd (%p2932_p5), [#allocation4], 4294966784  ;;  %s1421_s15 = sshll.u32 %s273_s11, 10  ;;  %s272_s1 = scalar_lea.sflag [#allocation7], %s271_s6 }
  0x8e   : > { %s2414_s28 = scalar_lea.vmem [#allocation6], %s1421_s15  ;;  %p2933_p0 = scmp.ne.s32.totalorder %s2919_s29, 0 }
  0x90   : > { %2118 = dma.done.wait (%p2933_p0), %s272_s1, 32768  }
  0x91   : > { %2120 = vsyncadd (%p2933_p0), %s272_s1, 4294934528  ;;  %s2420_s5 = scalar_lea.vmem [#allocation8], %s1421_s15  ;;  %s290_s10 = scalar_lea.sflag [#allocation10], %s273_s11 }
  0x92   : > { %s2422_s30 = scalar_lea.vmem [#allocation9], %s1421_s15 }
  0x93   : > { %2122 = dma.done.wait (%p2933_p0), %s290_s10, 16384  }
  0x94   : > { %2124 = vsyncadd (%p2933_p0), %s290_s10, 4294950912  ;;  %p1424_p13 = scmp.ne.s32.totalorder %s2143_s18, 0 }
  0x95   : > { %v2162_v0 = vmov (!%p1424_p13), 0.0  }
  0x96   : > { %331 = sbr.rel (%p1424_p13) target bundleno = 157 (0x9d), region = 56  ;;  %332 = vst [vmem:[#allocation2] sm:$0xff] (!%p1424_p13), %v2162_v0  ;;  %333 = vst [vmem:[#allocation2 + $0x8] sm:$0xff] (!%p1424_p13), %v2162_v0 }
  0x97   : > { %334 = vst [vmem:[#allocation2 + $0x10] sm:$0xff] (!%p1424_p13), %v2162_v0  ;;  %335 = vst [vmem:[#allocation2 + $0x18] sm:$0xff] (!%p1424_p13), %v2162_v0 }
  0x9d PF: > { %v341_v1 = vld [vmem:[%s2414_s28 + $0x8] sm:$0xff]  ;;  %v340_v3 = vld [vmem:[%s2414_s28] sm:$0xff]  ;;  %p1425_p1 = scmp.ne.s32.totalorder %s2143_s18, 1 }
  0x9e   : > { %v345_v2 = vld [vmem:[%s2414_s28 + $0x28] sm:$0xff]  ;;  %v344_v5 = vld [vmem:[%s2414_s28 + $0x20] sm:$0xff] }
  0x9f   : > { %v1434_v4 = vpack.c.bf16 %v345_v2, %v341_v1  ;;  %v349_v6 = vld [vmem:[%s2414_s28 + $0x48] sm:$0xff]  ;;  %v1436_v8 = vpack.c.bf16 %v344_v5, %v340_v3  ;;  %v348_v10 = vld [vmem:[%s2414_s28 + $0x40] sm:$0xff] }
  0xa0   : > { %v353_v7 = vld [vmem:[%s2414_s28 + $0x68] sm:$0xff]  ;;  %v352_v11 = vld [vmem:[%s2414_s28 + $0x60] sm:$0xff] }
  0xa1   : > { %v1438_v9 = vpack.c.bf16 %v353_v7, %v349_v6  ;;  %v357_v12 = vld [vmem:[%s2414_s28 + $0x88] sm:$0xff]  ;;  %1435 = vmatprep.subr.bf16.mxu1 %v1434_v4  ;;  %v1440_v14 = vpack.c.bf16 %v352_v11, %v348_v10  ;;  %v356_v16 = vld [vmem:[%s2414_s28 + $0x80] sm:$0xff] }
  0xa2   : > { %v361_v13 = vld [vmem:[%s2414_s28 + $0xa8] sm:$0xff]  ;;  %1437 = vmatpush1.bf16.msra.mxu1 %v1436_v8  ;;  %v360_v17 = vld [vmem:[%s2414_s28 + $0xa0] sm:$0xff] }
  0xa3   : > { %1439 = vmatprep.subr.bf16.mxu1 %v1438_v9  ;;  %v1442_v15 = vpack.c.bf16 %v361_v13, %v357_v12  ;;  %v365_v18 = vld [vmem:[%s2414_s28 + $0xc8] sm:$0xff]  ;;  %v1444_v20 = vpack.c.bf16 %v360_v17, %v356_v16  ;;  %v364_v22 = vld [vmem:[%s2414_s28 + $0xc0] sm:$0xff] }
  0xa4   : > { %v369_v19 = vld [vmem:[%s2414_s28 + $0xe8] sm:$0xff]  ;;  %v368_v23 = vld [vmem:[%s2414_s28 + $0xe0] sm:$0xff] }
  0xa5   : > { %v1446_v21 = vpack.c.bf16 %v369_v19, %v365_v18  ;;  %v373_v24 = vld [vmem:[%s2414_s28 + $0x108] sm:$0xff]  ;;  %v622_v28 = vld [vmem:[%s2420_s5] sm:$0xff]  ;;  %v1448_v30 = vpack.c.bf16 %v368_v23, %v364_v22 }
  0xa6   : > { %1441 = vmatpush1.bf16.msra.mxu1 %v1440_v14  ;;  %v377_v25 = vld [vmem:[%s2414_s28 + $0x128] sm:$0xff]  ;;  %v626_v29 = vld [vmem:[%s2420_s5 + $0x20] sm:$0xff] }
  0xa7   : > { %1443 = vmatprep.subr.bf16.mxu1 %v1442_v15  ;;  %v623_v26 = vld [vmem:[%s2420_s5 + $0x8] sm:$0xff]  ;;  %v372_v31 = vld [vmem:[%s2414_s28 + $0x100] sm:$0xff]  ;;  %v1564_v34 = vpack.c.bf16 %v626_v29, %v622_v28  ;;  %v1450_v35 = vpack.c.bf16 %v377_v25, %v373_v24 }
  0xa8   : > { %v627_v27 = vld [vmem:[%s2420_s5 + $0x28] sm:$0xff]  ;;  %v376_v32 = vld [vmem:[%s2414_s28 + $0x120] sm:$0xff] }
  0xa9   : > { %v1562_v33 = vpack.c.bf16 %v627_v27, %v623_v26  ;;  %v381_v36 = vld [vmem:[%s2414_s28 + $0x148] sm:$0xff]  ;;  %v630_v41 = vld [vmem:[%s2420_s5 + $0x40] sm:$0xff]  ;;  %v1452_v44 = vpack.c.bf16 %v376_v32, %v372_v31 }
  0xaa   : > { %1445 = vmatpush1.bf16.msra.mxu1 %v1444_v20  ;;  %v631_v37 = vld [vmem:[%s2420_s5 + $0x48] sm:$0xff]  ;;  %v634_v42 = vld [vmem:[%s2420_s5 + $0x60] sm:$0xff] }
  0xab   : > { %1447 = vmatprep.subr.bf16.mxu1 %v1446_v21  ;;  %v635_v38 = vld [vmem:[%s2420_s5 + $0x68] sm:$0xff]  ;;  %1563 = vmatprep.subr.bf16.mxu0 %v1562_v33  ;;  %v1568_v43 = vpack.c.bf16 %v634_v42, %v630_v41  ;;  %v638_v47 = vld [vmem:[%s2420_s5 + $0x80] sm:$0xff] }
  0xac   : > { %v385_v39 = vld [vmem:[%s2414_s28 + $0x168] sm:$0xff]  ;;  %v1566_v40 = vpack.c.bf16 %v635_v38, %v631_v37  ;;  %1565 = vmatpush1.bf16.msra.mxu0 %v1564_v34  ;;  %v380_v49 = vld [vmem:[%s2414_s28 + $0x140] sm:$0xff] }
  0xad   : > { %v639_v45 = vld [vmem:[%s2420_s5 + $0x88] sm:$0xff]  ;;  %v1454_v48 = vpack.c.bf16 %v385_v39, %v381_v36  ;;  %v384_v50 = vld [vmem:[%s2414_s28 + $0x160] sm:$0xff] }
  0xae   : > { %1449 = vmatpush1.bf16.msra.mxu1 %v1448_v30  ;;  %1567 = vmatprep.subr.bf16.mxu0 %v1566_v40  ;;  %v643_v46 = vld [vmem:[%s2420_s5 + $0xa8] sm:$0xff]  ;;  %v642_v52 = vld [vmem:[%s2420_s5 + $0xa0] sm:$0xff]  ;;  %v1456_v58 = vpack.c.bf16 %v384_v50, %v380_v49 }
  0xaf   : > { %1451 = vmatprep.subr.bf16.mxu1 %v1450_v35  ;;  %v1570_v51 = vpack.c.bf16 %v643_v46, %v639_v45  ;;  %v389_v53 = vld [vmem:[%s2414_s28 + $0x188] sm:$0xff]  ;;  %v1572_v56 = vpack.c.bf16 %v642_v52, %v638_v47  ;;  %v388_v59 = vld [vmem:[%s2414_s28 + $0x180] sm:$0xff] }
  0xb0   : > { %v393_v54 = vld [vmem:[%s2414_s28 + $0x1a8] sm:$0xff]  ;;  %1569 = vmatpush1.bf16.msra.mxu0 %v1568_v43  ;;  %v646_v61 = vld [vmem:[%s2420_s5 + $0xc0] sm:$0xff] }
  0xb1   : > { %v647_v55 = vld [vmem:[%s2420_s5 + $0xc8] sm:$0xff]  ;;  %1571 = vmatprep.subr.bf16.mxu0 %v1570_v51  ;;  %v650_v62 = vld [vmem:[%s2420_s5 + $0xe0] sm:$0xff]  ;;  %v1458_v63 = vpack.c.bf16 %v393_v54, %v389_v53 }
  0xb2   : > { %v651_v57 = vld [vmem:[%s2420_s5 + $0xe8] sm:$0xff]  ;;  %1453 = vmatpush1.bf16.msra.mxu1 %v1452_v44  ;;  %v392_v0 = vld [vmem:[%s2414_s28 + $0x1a0] sm:$0xff]  ;;  %v1576_v5 = vpack.c.bf16 %v650_v62, %v646_v61 }
  0xb3   : > { %v1574_v60 = vpack.c.bf16 %v651_v57, %v647_v55  ;;  %1455 = vmatprep.subr.bf16.mxu1 %v1454_v48  ;;  %v655_v1 = vld [vmem:[%s2420_s5 + $0x108] sm:$0xff]  ;;  %v1460_v6 = vpack.c.bf16 %v392_v0, %v388_v59  ;;  %v396_v7 = vld [vmem:[%s2414_s28 + $0x1c0] sm:$0xff] }
  0xb4   : > { %v659_v2 = vld [vmem:[%s2420_s5 + $0x128] sm:$0xff]  ;;  %1573 = vmatpush1.bf16.msra.mxu0 %v1572_v56  ;;  %v654_v9 = vld [vmem:[%s2420_s5 + $0x100] sm:$0xff] }
  0xb5   : > { %v397_v3 = vld [vmem:[%s2414_s28 + $0x1c8] sm:$0xff]  ;;  %1575 = vmatprep.subr.bf16.mxu0 %v1574_v60  ;;  %v1578_v8 = vpack.c.bf16 %v659_v2, %v655_v1  ;;  %v658_v10 = vld [vmem:[%s2420_s5 + $0x120] sm:$0xff] }
  0xb6   : > { %v401_v4 = vld [vmem:[%s2414_s28 + $0x1e8] sm:$0xff]  ;;  %1457 = vmatpush1.bf16.msra.mxu1 %v1456_v58  ;;  %v400_v12 = vld [vmem:[%s2414_s28 + $0x1e0] sm:$0xff]  ;;  %v1580_v17 = vpack.c.bf16 %v658_v10, %v654_v9 }
  0xb7   : > { %1459 = vmatprep.subr.bf16.mxu1 %v1458_v63  ;;  %v1462_v11 = vpack.c.bf16 %v401_v4, %v397_v3  ;;  %v663_v13 = vld [vmem:[%s2420_s5 + $0x148] sm:$0xff]  ;;  %v1464_v18 = vpack.c.bf16 %v400_v12, %v396_v7  ;;  %v404_v19 = vld [vmem:[%s2414_s28 + $0x200] sm:$0xff] }
  0xb8   : > { %v667_v14 = vld [vmem:[%s2420_s5 + $0x168] sm:$0xff]  ;;  %1577 = vmatpush1.bf16.msra.mxu0 %v1576_v5  ;;  %v662_v21 = vld [vmem:[%s2420_s5 + $0x140] sm:$0xff] }
  0xb9   : > { %v405_v15 = vld [vmem:[%s2414_s28 + $0x208] sm:$0xff]  ;;  %1579 = vmatprep.subr.bf16.mxu0 %v1578_v8  ;;  %v1582_v20 = vpack.c.bf16 %v667_v14, %v663_v13  ;;  %v666_v22 = vld [vmem:[%s2420_s5 + $0x160] sm:$0xff] }
  0xba   : > { %v409_v16 = vld [vmem:[%s2414_s28 + $0x228] sm:$0xff]  ;;  %1461 = vmatpush1.bf16.msra.mxu1 %v1460_v6  ;;  %v408_v24 = vld [vmem:[%s2414_s28 + $0x220] sm:$0xff]  ;;  %v1584_v30 = vpack.c.bf16 %v666_v22, %v662_v21 }
  0xbb   : > { %1463 = vmatprep.subr.bf16.mxu1 %v1462_v11  ;;  %v1466_v23 = vpack.c.bf16 %v409_v16, %v405_v15  ;;  %v671_v25 = vld [vmem:[%s2420_s5 + $0x188] sm:$0xff]  ;;  %v412_v29 = vld [vmem:[%s2414_s28 + $0x240] sm:$0xff]  ;;  %v1468_v31 = vpack.c.bf16 %v408_v24, %v404_v19 }
  0xbc   : > { %v675_v26 = vld [vmem:[%s2420_s5 + $0x1a8] sm:$0xff]  ;;  %1581 = vmatpush1.bf16.msra.mxu0 %v1580_v17  ;;  %v670_v33 = vld [vmem:[%s2420_s5 + $0x180] sm:$0xff] }
  0xbd   : > { %v413_v27 = vld [vmem:[%s2414_s28 + $0x248] sm:$0xff]  ;;  %1583 = vmatprep.subr.bf16.mxu0 %v1582_v20  ;;  %v1586_v32 = vpack.c.bf16 %v675_v26, %v671_v25  ;;  %v674_v34 = vld [vmem:[%s2420_s5 + $0x1a0] sm:$0xff] }
  0xbe   : > { %v417_v28 = vld [vmem:[%s2414_s28 + $0x268] sm:$0xff]  ;;  %1465 = vmatpush1.bf16.msra.mxu1 %v1464_v18  ;;  %v416_v37 = vld [vmem:[%s2414_s28 + $0x260] sm:$0xff]  ;;  %v1588_v42 = vpack.c.bf16 %v674_v34, %v670_v33 }
  0xbf   : > { %v2496_v35 = vld [vmem:[#allocation3 + $0x8] sm:$0xff]  ;;  %1467 = vmatprep.subr.bf16.mxu1 %v1466_v23  ;;  %v1470_v36 = vpack.c.bf16 %v417_v28, %v413_v27  ;;  %v1472_v43 = vpack.c.bf16 %v416_v37, %v412_v29  ;;  %v420_v44 = vld [vmem:[%s2414_s28 + $0x280] sm:$0xff] }
  0xc0   : > { %v679_v38 = vld [vmem:[%s2420_s5 + $0x1c8] sm:$0xff]  ;;  %532 = vmatprep.mubr.f32.mxu1 %v2496_v35  ;;  %814 = vmatprep.mubr.f32.mxu0 %v2496_v35  ;;  %v678_v46 = vld [vmem:[%s2420_s5 + $0x1c0] sm:$0xff] }
  0xc1   : > { %v683_v39 = vld [vmem:[%s2420_s5 + $0x1e8] sm:$0xff]  ;;  %1585 = vmatpush1.bf16.msra.mxu0 %v1584_v30  ;;  %v682_v47 = vld [vmem:[%s2420_s5 + $0x1e0] sm:$0xff] }
  0xc2   : > { %v421_v40 = vld [vmem:[%s2414_s28 + $0x288] sm:$0xff]  ;;  %1469 = vmatpush1.bf16.msra.mxu1 %v1468_v31  ;;  %1587 = vmatprep.subr.bf16.mxu0 %v1586_v32  ;;  %v1590_v45 = vpack.c.bf16 %v683_v39, %v679_v38  ;;  %v424_v49 = vld [vmem:[%s2414_s28 + $0x2a0] sm:$0xff]  ;;  %v1592_v54 = vpack.c.bf16 %v682_v47, %v678_v46 }
  0xc3   : > { %v425_v41 = vld [vmem:[%s2414_s28 + $0x2a8] sm:$0xff]  ;;  %1471 = vmatprep.subr.bf16.mxu1 %v1470_v36  ;;  %v1476_v55 = vpack.c.bf16 %v424_v49, %v420_v44  ;;  %v428_v56 = vld [vmem:[%s2414_s28 + $0x2c0] sm:$0xff]  ;;  %v343_v49 = vld [vmem:[%s2414_s28 + $0x18] sm:$0xff] }
  0xc4   : > { %v1474_v48 = vpack.c.bf16 %v425_v41, %v421_v40  ;;  %v687_v50 = vld [vmem:[%s2420_s5 + $0x208] sm:$0xff]  ;;  %v686_v58 = vld [vmem:[%s2420_s5 + $0x200] sm:$0xff] }
  0xc5   : > { %v691_v51 = vld [vmem:[%s2420_s5 + $0x228] sm:$0xff]  ;;  %1589 = vmatpush1.bf16.msra.mxu0 %v1588_v42  ;;  %v690_v59 = vld [vmem:[%s2420_s5 + $0x220] sm:$0xff] }
  0xc6   : > { %v429_v52 = vld [vmem:[%s2414_s28 + $0x2c8] sm:$0xff]  ;;  %1473 = vmatpush1.bf16.msra.mxu1 %v1472_v43  ;;  %1591 = vmatprep.subr.bf16.mxu0 %v1590_v45  ;;  %v1594_v57 = vpack.c.bf16 %v691_v51, %v687_v50  ;;  %v432_v61 = vld [vmem:[%s2414_s28 + $0x2e0] sm:$0xff]  ;;  %v1596_v2 = vpack.c.bf16 %v690_v59, %v686_v58  ;;  %v347_v50 = vld [vmem:[%s2414_s28 + $0x38] sm:$0xff] }
  0xc7   : > { %v433_v53 = vld [vmem:[%s2414_s28 + $0x2e8] sm:$0xff]  ;;  %1475 = vmatprep.subr.bf16.mxu1 %v1474_v48  ;;  %v1480_v3 = vpack.c.bf16 %v432_v61, %v428_v56  ;;  %v436_v4 = vld [vmem:[%s2414_s28 + $0x300] sm:$0xff]  ;;  %v346_v58 = vld [vmem:[%s2414_s28 + $0x30] sm:$0xff] }
  0xc8   : > { %v1478_v60 = vpack.c.bf16 %v433_v53, %v429_v52  ;;  %v695_v62 = vld [vmem:[%s2420_s5 + $0x248] sm:$0xff]  ;;  %v694_v6 = vld [vmem:[%s2420_s5 + $0x240] sm:$0xff]  ;;  %v342_v53 = vld [vmem:[%s2414_s28 + $0x10] sm:$0xff] }
  0xc9   : > { %v699_v63 = vld [vmem:[%s2420_s5 + $0x268] sm:$0xff]  ;;  %1593 = vmatpush1.bf16.msra.mxu0 %v1592_v54  ;;  %v698_v7 = vld [vmem:[%s2420_s5 + $0x260] sm:$0xff]  ;;  %v351_v61 = vld [vmem:[%s2414_s28 + $0x58] sm:$0xff] }
  0xca   : > { %v437_v0 = vld [vmem:[%s2414_s28 + $0x308] sm:$0xff]  ;;  %1477 = vmatpush1.bf16.msra.mxu1 %v1476_v55  ;;  %1595 = vmatprep.subr.bf16.mxu0 %v1594_v57  ;;  %v1598_v5 = vpack.c.bf16 %v699_v63, %v695_v62  ;;  %v440_v9 = vld [vmem:[%s2414_s28 + $0x320] sm:$0xff]  ;;  %v1600_v14 = vpack.c.bf16 %v698_v7, %v694_v6  ;;  %v1498_v57 = vpack.c.bf16 %v347_v50, %v343_v49  ;;  %v355_v62 = vld [vmem:[%s2414_s28 + $0x78] sm:$0xff] }
  0xcb   : > { %v441_v1 = vld [vmem:[%s2414_s28 + $0x328] sm:$0xff]  ;;  %1479 = vmatprep.subr.bf16.mxu1 %v1478_v60  ;;  %v1484_v15 = vpack.c.bf16 %v440_v9, %v436_v4  ;;  %v444_v16 = vld [vmem:[%s2414_s28 + $0x340] sm:$0xff]  ;;  %v1502_v6 = vpack.c.bf16 %v355_v62, %v351_v61  ;;  %v354_v7 = vld [vmem:[%s2414_s28 + $0x70] sm:$0xff] }
  0xcc   : > { %v1482_v8 = vpack.c.bf16 %v441_v1, %v437_v0  ;;  %v703_v10 = vld [vmem:[%s2420_s5 + $0x288] sm:$0xff]  ;;  %v702_v18 = vld [vmem:[%s2420_s5 + $0x280] sm:$0xff]  ;;  %v1500_v1 = vpack.c.bf16 %v346_v58, %v342_v53  ;;  %v403_v49 = vld [vmem:[%s2414_s28 + $0x1f8] sm:$0xff] }
  0xcd   : > { %v707_v11 = vld [vmem:[%s2420_s5 + $0x2a8] sm:$0xff]  ;;  %1597 = vmatpush1.bf16.msra.mxu0 %v1596_v2  ;;  %v706_v19 = vld [vmem:[%s2420_s5 + $0x2a0] sm:$0xff]  ;;  %v350_v2 = vld [vmem:[%s2414_s28 + $0x50] sm:$0xff] }
  0xce   : > { %v445_v12 = vld [vmem:[%s2414_s28 + $0x348] sm:$0xff]  ;;  %1481 = vmatpush1.bf16.msra.mxu1 %v1480_v3  ;;  %1599 = vmatprep.subr.bf16.mxu0 %v1598_v5  ;;  %v1602_v17 = vpack.c.bf16 %v707_v11, %v703_v10  ;;  %v448_v21 = vld [vmem:[%s2414_s28 + $0x360] sm:$0xff]  ;;  %v1604_v26 = vpack.c.bf16 %v706_v19, %v702_v18  ;;  %v359_v10 = vld [vmem:[%s2414_s28 + $0x98] sm:$0xff] }
  0xcf   : > { %v449_v13 = vld [vmem:[%s2414_s28 + $0x368] sm:$0xff]  ;;  %1483 = vmatprep.subr.bf16.mxu1 %v1482_v8  ;;  %v1488_v27 = vpack.c.bf16 %v448_v21, %v444_v16  ;;  %v452_v28 = vld [vmem:[%s2414_s28 + $0x380] sm:$0xff]  ;;  %v363_v11 = vld [vmem:[%s2414_s28 + $0xb8] sm:$0xff] }
  0xd0   : > { %v1486_v20 = vpack.c.bf16 %v449_v13, %v445_v12  ;;  %v711_v22 = vld [vmem:[%s2420_s5 + $0x2c8] sm:$0xff]  ;;  %v710_v30 = vld [vmem:[%s2420_s5 + $0x2c0] sm:$0xff]  ;;  %v2571_v12 = vld [vmem:[#allocation3 + $0x18] sm:$0xff]  ;;  %v1506_v19 = vpack.c.bf16 %v363_v11, %v359_v10 }
  0xd1   : > { %v715_v23 = vld [vmem:[%s2420_s5 + $0x2e8] sm:$0xff]  ;;  %1601 = vmatpush1.bf16.msra.mxu0 %v1600_v14  ;;  %v714_v31 = vld [vmem:[%s2420_s5 + $0x2e0] sm:$0xff]  ;;  %v1504_v14 = vpack.c.bf16 %v354_v7, %v350_v2  ;;  %v2576_v18 = vld [vmem:[#allocation3 + $0x10] sm:$0xff] }
  0xd2   : > { %v453_v24 = vld [vmem:[%s2414_s28 + $0x388] sm:$0xff]  ;;  %1485 = vmatpush1.bf16.msra.mxu1 %v1484_v15  ;;  %1603 = vmatprep.subr.bf16.mxu0 %v1602_v17  ;;  %v1606_v29 = vpack.c.bf16 %v715_v23, %v711_v22  ;;  %v456_v33 = vld [vmem:[%s2414_s28 + $0x3a0] sm:$0xff]  ;;  %v1608_v39 = vpack.c.bf16 %v714_v31, %v710_v30  ;;  %v362_v21 = vld [vmem:[%s2414_s28 + $0xb0] sm:$0xff] }
  0xd3   : > { %v457_v25 = vld [vmem:[%s2414_s28 + $0x3a8] sm:$0xff]  ;;  %1487 = vmatprep.subr.bf16.mxu1 %v1486_v20  ;;  %v1492_v40 = vpack.c.bf16 %v456_v33, %v452_v28  ;;  %v460_v41 = vld [vmem:[%s2414_s28 + $0x3c0] sm:$0xff]  ;;  %v358_v20 = vld [vmem:[%s2414_s28 + $0x90] sm:$0xff] }
  0xd4   : > { %v1490_v32 = vpack.c.bf16 %v457_v25, %v453_v24  ;;  %v719_v34 = vld [vmem:[%s2420_s5 + $0x308] sm:$0xff]  ;;  %v718_v43 = vld [vmem:[%s2420_s5 + $0x300] sm:$0xff]  ;;  %v367_v22 = vld [vmem:[%s2414_s28 + $0xd8] sm:$0xff]  ;;  %v1508_v25 = vpack.c.bf16 %v362_v21, %v358_v20 }
  0xd5   : > { %v723_v36 = vld [vmem:[%s2420_s5 + $0x328] sm:$0xff]  ;;  %1605 = vmatpush1.bf16.msra.mxu0 %v1604_v26  ;;  %v722_v44 = vld [vmem:[%s2420_s5 + $0x320] sm:$0xff]  ;;  %v371_v23 = vld [vmem:[%s2414_s28 + $0xf8] sm:$0xff] }
  0xd6   : > { %v461_v37 = vld [vmem:[%s2414_s28 + $0x3c8] sm:$0xff]  ;;  %1489 = vmatpush1.bf16.msra.mxu1 %v1488_v27  ;;  %1607 = vmatprep.subr.bf16.mxu0 %v1606_v29  ;;  %v1610_v42 = vpack.c.bf16 %v723_v36, %v719_v34  ;;  %v464_v46 = vld [vmem:[%s2414_s28 + $0x3e0] sm:$0xff]  ;;  %v1612_v51 = vpack.c.bf16 %v722_v44, %v718_v43  ;;  %v1510_v26 = vpack.c.bf16 %v371_v23, %v367_v22  ;;  %v366_v27 = vld [vmem:[%s2414_s28 + $0xd0] sm:$0xff] }
  0xd7   : > { %v465_v38 = vld [vmem:[%s2414_s28 + $0x3e8] sm:$0xff]  ;;  %1491 = vmatprep.subr.bf16.mxu1 %v1490_v32  ;;  %v1496_v52 = vpack.c.bf16 %v464_v46, %v460_v41  ;;  %v726_v55 = vld [vmem:[%s2420_s5 + $0x340] sm:$0xff]  ;;  %v370_v28 = vld [vmem:[%s2414_s28 + $0xf0] sm:$0xff] }
  0xd8   : > { %v1494_v45 = vpack.c.bf16 %v465_v38, %v461_v37  ;;  %v727_v47 = vld [vmem:[%s2420_s5 + $0x348] sm:$0xff]  ;;  %v730_v56 = vld [vmem:[%s2420_s5 + $0x360] sm:$0xff]  ;;  %v375_v29 = vld [vmem:[%s2414_s28 + $0x118] sm:$0xff]  ;;  %v1512_v31 = vpack.c.bf16 %v370_v28, %v366_v27 }
  0xd9   : > { %v731_v48 = vld [vmem:[%s2420_s5 + $0x368] sm:$0xff]  ;;  %1609 = vmatpush1.bf16.msra.mxu0 %v1608_v39  ;;  %v2561_v63 = vld [vmem:[#allocation3] sm:$0xff]  ;;  %v1616_v0 = vpack.c.bf16 %v730_v56, %v726_v55  ;;  %v379_v30 = vld [vmem:[%s2414_s28 + $0x138] sm:$0xff] }
  0xda   : > { %1493 = vmatpush1.bf16.msra.mxu1 %v1492_v40  ;;  %1611 = vmatprep.subr.bf16.mxu0 %v1610_v42  ;;  %v1614_v54 = vpack.c.bf16 %v731_v48, %v727_v47  ;;  %v735_v59 = vld [vmem:[%s2420_s5 + $0x388] sm:$0xff]  ;;  %v734_v4 = vld [vmem:[%s2420_s5 + $0x380] sm:$0xff]  ;;  %v1514_v32 = vpack.c.bf16 %v379_v30, %v375_v29  ;;  %v374_v33 = vld [vmem:[%s2414_s28 + $0x110] sm:$0xff] }
  0xdb   : > { %1495 = vmatprep.subr.bf16.mxu1 %v1494_v45  ;;  %v739_v60 = vld [vmem:[%s2420_s5 + $0x3a8] sm:$0xff]  ;;  %v738_v5 = vld [vmem:[%s2420_s5 + $0x3a0] sm:$0xff]  ;;  %v378_v34 = vld [vmem:[%s2414_s28 + $0x130] sm:$0xff] }
  0xdc   : > { %v1618_v3 = vpack.c.bf16 %v739_v60, %v735_v59  ;;  %v743_v8 = vld [vmem:[%s2420_s5 + $0x3c8] sm:$0xff]  ;;  %v1620_v13 = vpack.c.bf16 %v738_v5, %v734_v4  ;;  %v742_v16 = vld [vmem:[%s2420_s5 + $0x3c0] sm:$0xff]  ;;  %v383_v36 = vld [vmem:[%s2414_s28 + $0x158] sm:$0xff]  ;;  %v1516_v38 = vpack.c.bf16 %v378_v34, %v374_v33 }
  0xdd   : > { %1613 = vmatpush1.bf16.msra.mxu0 %v1612_v51  ;;  %v747_v9 = vld [vmem:[%s2420_s5 + $0x3e8] sm:$0xff]  ;;  %v746_v17 = vld [vmem:[%s2420_s5 + $0x3e0] sm:$0xff]  ;;  %v387_v37 = vld [vmem:[%s2414_s28 + $0x178] sm:$0xff] }
  0xde   : > { %1497 = vmatpush1.bf16.msra.mxu1 %v1496_v52  ;;  %1615 = vmatprep.subr.bf16.mxu0 %v1614_v54  ;;  %v1622_v15 = vpack.c.bf16 %v747_v9, %v743_v8  ;;  %v1624_v24 = vpack.c.bf16 %v746_v17, %v742_v16  ;;  %v1518_v39 = vpack.c.bf16 %v387_v37, %v383_v36  ;;  %v382_v40 = vld [vmem:[%s2414_s28 + $0x150] sm:$0xff]  ;;  %v391_v42 = vld [vmem:[%s2414_s28 + $0x198] sm:$0xff]  ;;  %v973_v50 = vld [vmem:[%s2422_s30 + $0x8] sm:$0xff] }
  0xdf   : > { %1499 = vmatprep.subr.bf16.mxu1 %v1498_v57  ;;  %v386_v41 = vld [vmem:[%s2414_s28 + $0x170] sm:$0xff]  ;;  %v395_v43 = vld [vmem:[%s2414_s28 + $0x1b8] sm:$0xff]  ;;  %v972_v54 = vld [vmem:[%s2422_s30] sm:$0xff] }
  0xe0   : > { %v1520_v44 = vpack.c.bf16 %v386_v41, %v382_v40  ;;  %v1522_v45 = vpack.c.bf16 %v395_v43, %v391_v42  ;;  %v390_v46 = vld [vmem:[%s2414_s28 + $0x190] sm:$0xff]  ;;  %v399_v48 = vld [vmem:[%s2414_s28 + $0x1d8] sm:$0xff]  ;;  %v977_v59 = vld [vmem:[%s2422_s30 + $0x28] sm:$0xff] }
  0xe1   : > { %533 = vmatmul.mubr.f32.vlgmr.msra.gmra.mrb[0].mxu1 %v2561_v63  ;;  %1617 = vmatpush1.bf16.msra.mxu0 %v1616_v0  ;;  %v394_v47 = vld [vmem:[%s2414_s28 + $0x1b0] sm:$0xff]  ;;  %v975_v53 = vld [vmem:[%s2422_s30 + $0x18] sm:$0xff]  ;;  %v976_v61 = vld [vmem:[%s2422_s30 + $0x20] sm:$0xff]  ;;  %v1526_v62 = vpack.c.bf16 %v403_v49, %v399_v48 }
  0xe2   : > { %1501 = vmatpush1.bf16.msra.mxu1 %v1500_v1  ;;  %1619 = vmatprep.subr.bf16.mxu0 %v1618_v3  ;;  %v398_v51 = vld [vmem:[%s2414_s28 + $0x1d0] sm:$0xff]  ;;  %v1524_v56 = vpack.c.bf16 %v394_v47, %v390_v46  ;;  %v1690_v57 = vpack.c.bf16 %v975_v53, %v973_v50  ;;  %v979_v60 = vld [vmem:[%s2422_s30 + $0x38] sm:$0xff]  ;;  %v981_v2 = vld [vmem:[%s2422_s30 + $0x48] sm:$0xff] }
  0xe3   : > { %1503 = vmatprep.subr.bf16.mxu1 %v1502_v6  ;;  %538 = vmatprep.mubr.f32.mxu1 %v2571_v12  ;;  %v402_v52 = vld [vmem:[%s2414_s28 + $0x1f0] sm:$0xff]  ;;  %v1694_v0 = vpack.c.bf16 %v979_v60, %v977_v59  ;;  %v983_v3 = vld [vmem:[%s2422_s30 + $0x58] sm:$0xff]  ;;  %v980_v10 = vld [vmem:[%s2422_s30 + $0x40] sm:$0xff] }
  0xe4   : > { %v974_v55 = vld [vmem:[%s2422_s30 + $0x10] sm:$0xff]  ;;  %v407_v4 = vld [vmem:[%s2414_s28 + $0x218] sm:$0xff]  ;;  %v1528_v7 = vpack.c.bf16 %v402_v52, %v398_v51  ;;  %v1698_v9 = vpack.c.bf16 %v983_v3, %v981_v2  ;;  %v989_v28 = vld [vmem:[%s2422_s30 + $0x88] sm:$0xff] }
  0xe5   : > { %1621 = vmatpush1.bf16.msra.mxu0 %v1620_v13  ;;  %539 = vmatmul.mubr.f32.gmra.mrb[2].mxu1 %v2576_v18  ;;  %v1692_v58 = vpack.c.bf16 %v974_v55, %v972_v54  ;;  %v978_v1 = vld [vmem:[%s2422_s30 + $0x30] sm:$0xff]  ;;  %v411_v5 = vld [vmem:[%s2414_s28 + $0x238] sm:$0xff]  ;;  %v988_v37 = vld [vmem:[%s2422_s30 + $0x80] sm:$0xff] }
  0xe6   : > { %1505 = vmatpush1.bf16.msra.mxu1 %v1504_v14  ;;  %1623 = vmatprep.subr.bf16.mxu0 %v1622_v15  ;;  %v1696_v6 = vpack.c.bf16 %v978_v1, %v976_v61  ;;  %v406_v8 = vld [vmem:[%s2414_s28 + $0x210] sm:$0xff]  ;;  %v1530_v13 = vpack.c.bf16 %v411_v5, %v407_v4  ;;  %v985_v15 = vld [vmem:[%s2422_s30 + $0x68] sm:$0xff]  ;;  %v987_v16 = vld [vmem:[%s2422_s30 + $0x78] sm:$0xff] }
  0xe7   : > { %1507 = vmatprep.subr.bf16.mxu1 %v1506_v19  ;;  %609 = vmatprep.mubr.f32.mxu1 %v2496_v35  ;;  %v982_v11 = vld [vmem:[%s2422_s30 + $0x50] sm:$0xff]  ;;  %v415_v17 = vld [vmem:[%s2414_s28 + $0x258] sm:$0xff]  ;;  %v1702_v23 = vpack.c.bf16 %v987_v16, %v985_v15  ;;  %v993_v41 = vld [vmem:[%s2422_s30 + $0xa8] sm:$0xff] }
  0xe8   : > { %v410_v14 = vld [vmem:[%s2414_s28 + $0x230] sm:$0xff]  ;;  %v419_v19 = vld [vmem:[%s2414_s28 + $0x278] sm:$0xff]  ;;  %v1700_v20 = vpack.c.bf16 %v982_v11, %v980_v10  ;;  %v992_v49 = vld [vmem:[%s2422_s30 + $0xa0] sm:$0xff] }
  0xe9   : > { %1625 = vmatpush1.bf16.msra.mxu0 %v1624_v24  ;;  %v1532_v21 = vpack.c.bf16 %v410_v14, %v406_v8  ;;  %v414_v22 = vld [vmem:[%s2414_s28 + $0x250] sm:$0xff]  ;;  %v984_v24 = vld [vmem:[%s2422_s30 + $0x60] sm:$0xff]  ;;  %v991_v29 = vld [vmem:[%s2422_s30 + $0x98] sm:$0xff] }
  0xea   : > { %1509 = vmatpush1.bf16.msra.mxu1 %v1508_v25  ;;  %1691 = vmatprep.subr.bf16.mxu0 %v1690_v57  ;;  %v986_v25 = vld [vmem:[%s2422_s30 + $0x70] sm:$0xff]  ;;  %v423_v30 = vld [vmem:[%s2414_s28 + $0x298] sm:$0xff]  ;;  %v1706_v36 = vpack.c.bf16 %v991_v29, %v989_v28  ;;  %v997_v53 = vld [vmem:[%s2422_s30 + $0xc8] sm:$0xff] }
  0xeb   : > { %1511 = vmatprep.subr.bf16.mxu1 %v1510_v26  ;;  %v1534_v26 = vpack.c.bf16 %v419_v19, %v415_v17  ;;  %v418_v27 = vld [vmem:[%s2414_s28 + $0x270] sm:$0xff]  ;;  %v995_v42 = vld [vmem:[%s2422_s30 + $0xb8] sm:$0xff]  ;;  %v996_v61 = vld [vmem:[%s2422_s30 + $0xc0] sm:$0xff] }
  0xec   : > { %815 = vmatmul.mubr.f32.vlgmr.msra.gmra.mrb[0].mxu0 %v2561_v63  ;;  %v1536_v33 = vpack.c.bf16 %v418_v27, %v414_v22  ;;  %v422_v34 = vld [vmem:[%s2414_s28 + $0x290] sm:$0xff]  ;;  %v431_v43 = vld [vmem:[%s2414_s28 + $0x2d8] sm:$0xff]  ;;  %v1710_v48 = vpack.c.bf16 %v995_v42, %v993_v41  ;;  %v1001_v2 = vld [vmem:[%s2422_s30 + $0xe8] sm:$0xff] }
  0xed   : > { %820 = vmatprep.mubr.f32.mxu0 %v2571_v12  ;;  %1693 = vmatpush1.bf16.msra.mxu0 %v1692_v58  ;;  %v426_v40 = vld [vmem:[%s2414_s28 + $0x2b0] sm:$0xff]  ;;  %v999_v54 = vld [vmem:[%s2422_s30 + $0xd8] sm:$0xff] }
  0xee   : > { %1513 = vmatpush1.bf16.msra.mxu1 %v1512_v31  ;;  %1695 = vmatprep.subr.bf16.mxu0 %v1694_v0  ;;  %v427_v31 = vld [vmem:[%s2414_s28 + $0x2b8] sm:$0xff]  ;;  %v1540_v46 = vpack.c.bf16 %v426_v40, %v422_v34  ;;  %v430_v47 = vld [vmem:[%s2414_s28 + $0x2d0] sm:$0xff]  ;;  %v1714_v60 = vpack.c.bf16 %v999_v54, %v997_v53 }
  0xef   : > { %1515 = vmatprep.subr.bf16.mxu1 %v1514_v32  ;;  %v1704_v32 = vpack.c.bf16 %v986_v25, %v984_v24  ;;  %v994_v50 = vld [vmem:[%s2422_s30 + $0xb0] sm:$0xff]  ;;  %v439_v55 = vld [vmem:[%s2414_s28 + $0x318] sm:$0xff] }
  0xf0   : > { %821 = vmatmul.mubr.f32.gmra.mrb[2].mxu0 %v2576_v18  ;;  %v434_v52 = vld [vmem:[%s2414_s28 + $0x2f0] sm:$0xff]  ;;  %v1712_v57 = vpack.c.bf16 %v994_v50, %v992_v49  ;;  %v1003_v3 = vld [vmem:[%s2422_s30 + $0xf8] sm:$0xff] }
  0xf1   : > { %1697 = vmatpush1.bf16.msra.mxu0 %v1696_v6  ;;  %v1544_v58 = vpack.c.bf16 %v434_v52, %v430_v47  ;;  %v438_v59 = vld [vmem:[%s2414_s28 + $0x310] sm:$0xff]  ;;  %v447_v4 = vld [vmem:[%s2414_s28 + $0x358] sm:$0xff]  ;;  %v1718_v8 = vpack.c.bf16 %v1003_v3, %v1001_v2 }
  0xf2   : > { %1517 = vmatpush1.bf16.msra.mxu1 %v1516_v38  ;;  %1699 = vmatprep.subr.bf16.mxu0 %v1698_v9  ;;  %v990_v38 = vld [vmem:[%s2422_s30 + $0x90] sm:$0xff]  ;;  %v451_v5 = vld [vmem:[%s2414_s28 + $0x378] sm:$0xff] }
  0xf3   : > { %1519 = vmatprep.subr.bf16.mxu1 %v1518_v39  ;;  %v1538_v39 = vpack.c.bf16 %v427_v31, %v423_v30  ;;  %v442_v1 = vld [vmem:[%s2414_s28 + $0x330] sm:$0xff]  ;;  %v1550_v9 = vpack.c.bf16 %v451_v5, %v447_v4  ;;  %v459_v14 = vld [vmem:[%s2414_s28 + $0x3b8] sm:$0xff] }
  0xf4   : > { %v446_v10 = vld [vmem:[%s2414_s28 + $0x350] sm:$0xff]  ;;  %v629_v27 = vld [vmem:[%s2420_s5 + $0x38] sm:$0xff] }
  0xf5   : > { %1701 = vmatpush1.bf16.msra.mxu0 %v1700_v20  ;;  %v450_v11 = vld [vmem:[%s2414_s28 + $0x370] sm:$0xff]  ;;  %v463_v20 = vld [vmem:[%s2414_s28 + $0x3d8] sm:$0xff] }
  0xf6   : > { %1521 = vmatpush1.bf16.msra.mxu1 %v1520_v44  ;;  %1703 = vmatprep.subr.bf16.mxu0 %v1702_v23  ;;  %v435_v44 = vld [vmem:[%s2414_s28 + $0x2f8] sm:$0xff]  ;;  %v1552_v15 = vpack.c.bf16 %v450_v11, %v446_v10  ;;  %v454_v17 = vld [vmem:[%s2414_s28 + $0x390] sm:$0xff]  ;;  %v1005_v10 = vld [vmem:[%s2422_s30 + $0x108] sm:$0xff] }
  0xf7   : > { %1523 = vmatprep.subr.bf16.mxu1 %v1522_v45  ;;  %v1708_v45 = vpack.c.bf16 %v990_v38, %v988_v37  ;;  %v1542_v51 = vpack.c.bf16 %v435_v44, %v431_v43  ;;  %v458_v19 = vld [vmem:[%s2414_s28 + $0x3b0] sm:$0xff]  ;;  %v645_v40 = vld [vmem:[%s2420_s5 + $0xb8] sm:$0xff] }
  0xf8   : > { %v1556_v22 = vpack.c.bf16 %v458_v19, %v454_v17  ;;  %v462_v24 = vld [vmem:[%s2414_s28 + $0x3d0] sm:$0xff]  ;;  %v661_v52 = vld [vmem:[%s2420_s5 + $0x138] sm:$0xff] }
  0xf9   : > { %1705 = vmatpush1.bf16.msra.mxu0 %v1704_v32  ;;  %v466_v25 = vld [vmem:[%s2414_s28 + $0x3f0] sm:$0xff]  ;;  %v633_v32 = vld [vmem:[%s2420_s5 + $0x58] sm:$0xff] }
  0xfa   : > { %1525 = vmatpush1.bf16.msra.mxu1 %v1524_v56  ;;  %1707 = vmatprep.subr.bf16.mxu0 %v1706_v36  ;;  %v443_v56 = vld [vmem:[%s2414_s28 + $0x338] sm:$0xff]  ;;  %v1560_v28 = vpack.c.bf16 %v466_v25, %v462_v24  ;;  %v624_v30 = vld [vmem:[%s2420_s5 + $0x10] sm:$0xff]  ;;  %v1009_v24 = vld [vmem:[%s2422_s30 + $0x128] sm:$0xff] }
  0xfb   : > { %1527 = vmatprep.subr.bf16.mxu1 %v1526_v62  ;;  %v998_v62 = vld [vmem:[%s2422_s30 + $0xd0] sm:$0xff]  ;;  %v1546_v0 = vpack.c.bf16 %v443_v56, %v439_v55  ;;  %v1007_v11 = vld [vmem:[%s2422_s30 + $0x118] sm:$0xff] }
  0xfc   : > { %v1716_v6 = vpack.c.bf16 %v998_v62, %v996_v61  ;;  %v628_v31 = vld [vmem:[%s2420_s5 + $0x30] sm:$0xff]  ;;  %v673_v62 = vld [vmem:[%s2420_s5 + $0x198] sm:$0xff] }
  0xfd   : > { %1709 = vmatpush1.bf16.msra.mxu0 %v1708_v45  ;;  %v1628_v34 = vpack.c.bf16 %v628_v31, %v624_v30  ;;  %v632_v37 = vld [vmem:[%s2420_s5 + $0x50] sm:$0xff]  ;;  %v649_v45 = vld [vmem:[%s2420_s5 + $0xd8] sm:$0xff] }
  0xfe   : > { %1529 = vmatpush1.bf16.msra.mxu1 %v1528_v7  ;;  %1711 = vmatprep.subr.bf16.mxu0 %v1710_v48  ;;  %v1548_v7 = vpack.c.bf16 %v442_v1, %v438_v59  ;;  %v636_v38 = vld [vmem:[%s2420_s5 + $0x70] sm:$0xff]  ;;  %v1000_v1 = vld [vmem:[%s2422_s30 + $0xe0] sm:$0xff]  ;;  %v1011_v25 = vld [vmem:[%s2422_s30 + $0x138] sm:$0xff] }
  0xff   : > { %1531 = vmatprep.subr.bf16.mxu1 %v1530_v13  ;;  %v455_v13 = vld [vmem:[%s2414_s28 + $0x398] sm:$0xff]  ;;  %v1632_v41 = vpack.c.bf16 %v636_v38, %v632_v37  ;;  %v640_v43 = vld [vmem:[%s2420_s5 + $0x90] sm:$0xff]  ;;  %v1013_v37 = vld [vmem:[%s2422_s30 + $0x148] sm:$0xff] }
 0x100   : > { %v1554_v16 = vpack.c.bf16 %v459_v14, %v455_v13  ;;  %v644_v44 = vld [vmem:[%s2420_s5 + $0xb0] sm:$0xff]  ;;  %v1722_v13 = vpack.c.bf16 %v1007_v11, %v1005_v10  ;;  %v1004_v14 = vld [vmem:[%s2422_s30 + $0x100] sm:$0xff]  ;;  %v1015_v38 = vld [vmem:[%s2422_s30 + $0x158] sm:$0xff] }
 0x101   : > { %1713 = vmatpush1.bf16.msra.mxu0 %v1712_v57  ;;  %v1636_v47 = vpack.c.bf16 %v644_v44, %v640_v43  ;;  %v648_v49 = vld [vmem:[%s2420_s5 + $0xd0] sm:$0xff]  ;;  %v665_v57 = vld [vmem:[%s2420_s5 + $0x158] sm:$0xff] }
 0x102   : > { %1533 = vmatpush1.bf16.msra.mxu1 %v1532_v21  ;;  %1715 = vmatprep.subr.bf16.mxu0 %v1714_v60  ;;  %v467_v21 = vld [vmem:[%s2414_s28 + $0x3f8] sm:$0xff]  ;;  %v652_v50 = vld [vmem:[%s2420_s5 + $0xf0] sm:$0xff] }
 0x103   : > { %1535 = vmatprep.subr.bf16.mxu1 %v1534_v26  ;;  %v1558_v23 = vpack.c.bf16 %v467_v21, %v463_v20  ;;  %v625_v26 = vld [vmem:[%s2420_s5 + $0x18] sm:$0xff]  ;;  %v1640_v53 = vpack.c.bf16 %v652_v50, %v648_v49  ;;  %v656_v55 = vld [vmem:[%s2420_s5 + $0x110] sm:$0xff]  ;;  %v1017_v49 = vld [vmem:[%s2422_s30 + $0x168] sm:$0xff] }
 0x104   : > { %v1626_v29 = vpack.c.bf16 %v629_v27, %v625_v26  ;;  %v660_v56 = vld [vmem:[%s2420_s5 + $0x130] sm:$0xff]  ;;  %v1726_v26 = vpack.c.bf16 %v1011_v25, %v1009_v24  ;;  %v1008_v27 = vld [vmem:[%s2422_s30 + $0x120] sm:$0xff]  ;;  %v1019_v50 = vld [vmem:[%s2422_s30 + $0x178] sm:$0xff] }
 0x105   : > { %1717 = vmatpush1.bf16.msra.mxu0 %v1716_v6  ;;  %v664_v60 = vld [vmem:[%s2420_s5 + $0x150] sm:$0xff]  ;;  %v1027_v10 = vld [vmem:[%s2422_s30 + $0x1b8] sm:$0xff] }
 0x106   : > { %1537 = vmatpush1.bf16.msra.mxu1 %v1536_v33  ;;  %1719 = vmatprep.subr.bf16.mxu0 %v1718_v8  ;;  %v637_v33 = vld [vmem:[%s2420_s5 + $0x78] sm:$0xff]  ;;  %v668_v61 = vld [vmem:[%s2420_s5 + $0x170] sm:$0xff] }
 0x107   : > { %1539 = vmatprep.subr.bf16.mxu1 %v1538_v39  ;;  %v1630_v36 = vpack.c.bf16 %v637_v33, %v633_v32  ;;  %v641_v39 = vld [vmem:[%s2420_s5 + $0x98] sm:$0xff]  ;;  %v1002_v2 = vld [vmem:[%s2422_s30 + $0xf0] sm:$0xff]  ;;  %v1648_v3 = vpack.c.bf16 %v668_v61, %v664_v60  ;;  %v1021_v60 = vld [vmem:[%s2422_s30 + $0x188] sm:$0xff] }
 0x108   : > { %v1634_v42 = vpack.c.bf16 %v645_v40, %v641_v39  ;;  %v1720_v4 = vpack.c.bf16 %v1002_v2, %v1000_v1  ;;  %v672_v6 = vld [vmem:[%s2420_s5 + $0x190] sm:$0xff]  ;;  %v681_v8 = vld [vmem:[%s2420_s5 + $0x1d8] sm:$0xff]  ;;  %v1730_v39 = vpack.c.bf16 %v1015_v38, %v1013_v37  ;;  %v1012_v40 = vld [vmem:[%s2422_s30 + $0x140] sm:$0xff] }
 0x109   : > { %v680_v20 = vld [vmem:[%s2420_s5 + $0x1d0] sm:$0xff]  ;;  %v1023_v61 = vld [vmem:[%s2422_s30 + $0x198] sm:$0xff] }
 0x10a   : > { %1541 = vmatpush1.bf16.msra.mxu1 %v1540_v46  ;;  %v653_v46 = vld [vmem:[%s2420_s5 + $0xf8] sm:$0xff]  ;;  %1721 = vmatpush1.bf16.msra.mxu0 %v1720_v4  ;;  %v684_v21 = vld [vmem:[%s2420_s5 + $0x1f0] sm:$0xff] }
 0x10b   : > { %1543 = vmatprep.subr.bf16.mxu1 %v1542_v51  ;;  %v1638_v48 = vpack.c.bf16 %v653_v46, %v649_v45  ;;  %v657_v51 = vld [vmem:[%s2420_s5 + $0x118] sm:$0xff]  ;;  %1723 = vmatprep.subr.bf16.mxu0 %v1722_v13  ;;  %v688_v32 = vld [vmem:[%s2420_s5 + $0x210] sm:$0xff]  ;;  %v1024_v13 = vld [vmem:[%s2422_s30 + $0x1a0] sm:$0xff] }
 0x10c   : > { %v1642_v54 = vpack.c.bf16 %v661_v52, %v657_v51  ;;  %v692_v33 = vld [vmem:[%s2420_s5 + $0x230] sm:$0xff]  ;;  %v1734_v51 = vpack.c.bf16 %v1019_v50, %v1017_v49  ;;  %v1016_v52 = vld [vmem:[%s2422_s30 + $0x160] sm:$0xff]  ;;  %v1031_v24 = vld [vmem:[%s2422_s30 + $0x1d8] sm:$0xff] }
 0x10d   : > { %v696_v45 = vld [vmem:[%s2420_s5 + $0x250] sm:$0xff]  ;;  %v1035_v37 = vld [vmem:[%s2422_s30 + $0x1f8] sm:$0xff] }
 0x10e   : > { %1545 = vmatpush1.bf16.msra.mxu1 %v1544_v58  ;;  %v1644_v58 = vpack.c.bf16 %v660_v56, %v656_v55  ;;  %v700_v46 = vld [vmem:[%s2420_s5 + $0x270] sm:$0xff] }
 0x10f   : > { %1547 = vmatprep.subr.bf16.mxu1 %v1546_v0  ;;  %v677_v0 = vld [vmem:[%s2420_s5 + $0x1b8] sm:$0xff]  ;;  %v1022_v1 = vld [vmem:[%s2422_s30 + $0x190] sm:$0xff] }
 0x110   : > { %v1650_v5 = vpack.c.bf16 %v677_v0, %v673_v62  ;;  %v1738_v62 = vpack.c.bf16 %v1023_v61, %v1021_v60  ;;  %v1020_v0 = vld [vmem:[%s2422_s30 + $0x180] sm:$0xff]  ;;  %v744_v50 = vld [vmem:[%s2420_s5 + $0x3d0] sm:$0xff] }
 0x112   : > { %1549 = vmatpush1.bf16.msra.mxu1 %v1548_v7  ;;  %v676_v7 = vld [vmem:[%s2420_s5 + $0x1b0] sm:$0xff] }
 0x113   : > { %1551 = vmatprep.subr.bf16.mxu1 %v1550_v9  ;;  %v685_v9 = vld [vmem:[%s2420_s5 + $0x1f8] sm:$0xff] }
 0x114   : > { %v1654_v19 = vpack.c.bf16 %v685_v9, %v681_v8  ;;  %v725_v8 = vld [vmem:[%s2420_s5 + $0x338] sm:$0xff]  ;;  %v1025_v9 = vld [vmem:[%s2422_s30 + $0x1a8] sm:$0xff] }
 0x115   : > { %v1742_v11 = vpack.c.bf16 %v1027_v10, %v1025_v9 }
 0x116   : > { %1553 = vmatpush1.bf16.msra.mxu1 %v1552_v15  ;;  %v1006_v15 = vld [vmem:[%s2422_s30 + $0x110] sm:$0xff] }
 0x117   : > { %1555 = vmatprep.subr.bf16.mxu1 %v1554_v16  ;;  %v1652_v16 = vpack.c.bf16 %v676_v7, %v672_v6  ;;  %v1724_v17 = vpack.c.bf16 %v1006_v15, %v1004_v14  ;;  %v716_v6 = vld [vmem:[%s2420_s5 + $0x2f0] sm:$0xff]  ;;  %v721_v7 = vld [vmem:[%s2420_s5 + $0x318] sm:$0xff] }
 0x118   : > { %v1026_v14 = vld [vmem:[%s2422_s30 + $0x1b0] sm:$0xff] }
 0x119   : > { %1725 = vmatpush1.bf16.msra.mxu0 %v1724_v17  ;;  %v1674_v17 = vpack.c.bf16 %v725_v8, %v721_v7 }
 0x11a   : > { %1557 = vmatpush1.bf16.msra.mxu1 %v1556_v22  ;;  %v689_v22 = vld [vmem:[%s2420_s5 + $0x218] sm:$0xff]  ;;  %1727 = vmatprep.subr.bf16.mxu0 %v1726_v26  ;;  %v1028_v26 = vld [vmem:[%s2422_s30 + $0x1c0] sm:$0xff] }
 0x11b   : > { %1559 = vmatprep.subr.bf16.mxu1 %v1558_v23  ;;  %v693_v23 = vld [vmem:[%s2420_s5 + $0x238] sm:$0xff] }
 0x11c   : > { %v1658_v31 = vpack.c.bf16 %v693_v23, %v689_v22  ;;  %v733_v22 = vld [vmem:[%s2420_s5 + $0x378] sm:$0xff]  ;;  %v1029_v23 = vld [vmem:[%s2422_s30 + $0x1c8] sm:$0xff] }
 0x11d   : > { %v1746_v25 = vpack.c.bf16 %v1031_v24, %v1029_v23 }
 0x11e   : > { %1561 = vmatpush1.bf16.msra.mxu1 %v1560_v28  ;;  %v1010_v28 = vld [vmem:[%s2422_s30 + $0x130] sm:$0xff] }
 0x11f   : > { %1627 = vmatprep.subr.bf16.mxu1 %v1626_v29  ;;  %v1656_v29 = vpack.c.bf16 %v684_v21, %v680_v20  ;;  %v1728_v30 = vpack.c.bf16 %v1010_v28, %v1008_v27  ;;  %v724_v20 = vld [vmem:[%s2420_s5 + $0x330] sm:$0xff]  ;;  %v729_v21 = vld [vmem:[%s2420_s5 + $0x358] sm:$0xff] }
 0x120   : > { %v1030_v27 = vld [vmem:[%s2422_s30 + $0x1d0] sm:$0xff] }
 0x121   : > { %610 = vmatmul.mubr.f32.vlgmr.msra.gmra.mrb[4].mxu1 %v2561_v63  ;;  %1729 = vmatpush1.bf16.msra.mxu0 %v1728_v30  ;;  %v1678_v30 = vpack.c.bf16 %v733_v22, %v729_v21  ;;  %v1041_v21 = vld [vmem:[%s2422_s30 + $0x228] sm:$0xff]  ;;  %v1043_v22 = vld [vmem:[%s2422_s30 + $0x238] sm:$0xff] }
 0x122   : > { %1629 = vmatpush1.bf16.msra.mxu1 %v1628_v34  ;;  %615 = vmatprep.mubr.f32.mxu1 %v2571_v12  ;;  %v697_v34 = vld [vmem:[%s2420_s5 + $0x258] sm:$0xff] }
 0x123   : > { %1631 = vmatprep.subr.bf16.mxu1 %v1630_v36  ;;  %v701_v36 = vld [vmem:[%s2420_s5 + $0x278] sm:$0xff]  ;;  %1731 = vmatprep.subr.bf16.mxu0 %v1730_v39  ;;  %v1032_v39 = vld [vmem:[%s2422_s30 + $0x1e0] sm:$0xff] }
 0x124   : > { %v1662_v44 = vpack.c.bf16 %v701_v36, %v697_v34  ;;  %v741_v34 = vld [vmem:[%s2420_s5 + $0x3b8] sm:$0xff]  ;;  %v1033_v36 = vld [vmem:[%s2422_s30 + $0x1e8] sm:$0xff] }
 0x125   : > { %616 = vmatmul.mubr.f32.gmra.mrb[6].mxu1 %v2576_v18  ;;  %v1750_v38 = vpack.c.bf16 %v1035_v37, %v1033_v36 }
 0x126   : > { %1633 = vmatpush1.bf16.msra.mxu1 %v1632_v41  ;;  %891 = vmatprep.mubr.f32.mxu1 %v2496_v35  ;;  %v669_v35 = vld [vmem:[%s2420_s5 + $0x178] sm:$0xff]  ;;  %v1014_v41 = vld [vmem:[%s2422_s30 + $0x150] sm:$0xff] }
 0x127   : > { %1635 = vmatprep.subr.bf16.mxu1 %v1634_v42  ;;  %v1646_v59 = vpack.c.bf16 %v669_v35, %v665_v57  ;;  %v1660_v42 = vpack.c.bf16 %v692_v33, %v688_v32  ;;  %v1732_v43 = vpack.c.bf16 %v1014_v41, %v1012_v40  ;;  %v704_v57 = vld [vmem:[%s2420_s5 + $0x290] sm:$0xff]  ;;  %v737_v33 = vld [vmem:[%s2420_s5 + $0x398] sm:$0xff] }
 0x128   : > { %v708_v35 = vld [vmem:[%s2420_s5 + $0x2b0] sm:$0xff] }
 0x129   : > { %1733 = vmatpush1.bf16.msra.mxu0 %v1732_v43  ;;  %v1668_v2 = vpack.c.bf16 %v708_v35, %v704_v57  ;;  %v732_v32 = vld [vmem:[%s2420_s5 + $0x370] sm:$0xff]  ;;  %v1682_v43 = vpack.c.bf16 %v741_v34, %v737_v33  ;;  %v1045_v33 = vld [vmem:[%s2422_s30 + $0x248] sm:$0xff]  ;;  %v1047_v34 = vld [vmem:[%s2422_s30 + $0x258] sm:$0xff] }
 0x12a   : > { %1637 = vmatpush1.bf16.msra.mxu1 %v1636_v47  ;;  %v705_v47 = vld [vmem:[%s2420_s5 + $0x298] sm:$0xff]  ;;  %1735 = vmatprep.subr.bf16.mxu0 %v1734_v51  ;;  %v1034_v40 = vld [vmem:[%s2422_s30 + $0x1f0] sm:$0xff] }
 0x12b   : > { %1639 = vmatprep.subr.bf16.mxu1 %v1638_v48  ;;  %v709_v48 = vld [vmem:[%s2420_s5 + $0x2b8] sm:$0xff]  ;;  %v748_v51 = vld [vmem:[%s2420_s5 + $0x3f0] sm:$0xff] }
 0x12c   : > { %v1666_v56 = vpack.c.bf16 %v709_v48, %v705_v47  ;;  %v749_v47 = vld [vmem:[%s2420_s5 + $0x3f8] sm:$0xff] }
 0x12e   : > { %1641 = vmatpush1.bf16.msra.mxu1 %v1640_v53  ;;  %v1018_v53 = vld [vmem:[%s2422_s30 + $0x170] sm:$0xff] }
 0x12f   : > { %1643 = vmatprep.subr.bf16.mxu1 %v1642_v54  ;;  %v1664_v54 = vpack.c.bf16 %v700_v46, %v696_v45  ;;  %v1736_v55 = vpack.c.bf16 %v1018_v53, %v1016_v52  ;;  %v740_v45 = vld [vmem:[%s2420_s5 + $0x3b0] sm:$0xff]  ;;  %v745_v46 = vld [vmem:[%s2420_s5 + $0x3d8] sm:$0xff]  ;;  %v1688_v52 = vpack.c.bf16 %v748_v51, %v744_v50  ;;  %v1037_v53 = vld [vmem:[%s2422_s30 + $0x208] sm:$0xff] }
 0x130   : > { %v1686_v49 = vpack.c.bf16 %v749_v47, %v745_v46  ;;  %v1048_v46 = vld [vmem:[%s2422_s30 + $0x260] sm:$0xff]  ;;  %v1050_v47 = vld [vmem:[%s2422_s30 + $0x270] sm:$0xff] }
 0x131   : > { %1737 = vmatpush1.bf16.msra.mxu0 %v1736_v55  ;;  %v1768_v50 = vpack.c.bf16 %v1050_v47, %v1048_v46  ;;  %v1088_v46 = vld [vmem:[%s2422_s30 + $0x3a0] sm:$0xff]  ;;  %v1090_v47 = vld [vmem:[%s2422_s30 + $0x3b0] sm:$0xff] }
 0x132   : > { %1645 = vmatpush1.bf16.msra.mxu1 %v1644_v58  ;;  %v713_v58 = vld [vmem:[%s2420_s5 + $0x2d8] sm:$0xff]  ;;  %1739 = vmatprep.subr.bf16.mxu0 %v1738_v62 }
 0x133   : > { %1647 = vmatprep.subr.bf16.mxu1 %v1646_v59  ;;  %v717_v59 = vld [vmem:[%s2420_s5 + $0x2f8] sm:$0xff] }
 0x134   : > { %v1670_v4 = vpack.c.bf16 %v717_v59, %v713_v58 }
 0x136   : > { %1649 = vmatpush1.bf16.msra.mxu1 %v1648_v3  ;;  %v1740_v3 = vpack.c.bf16 %v1022_v1, %v1020_v0 }
 0x137   : > { %1651 = vmatprep.subr.bf16.mxu1 %v1650_v5  ;;  %v712_v5 = vld [vmem:[%s2420_s5 + $0x2d0] sm:$0xff] }
 0x138   : > { %1741 = vmatpush1.bf16.msra.mxu0 %v1740_v3  ;;  %v1672_v15 = vpack.c.bf16 %v716_v6, %v712_v5 }
 0x139   : > { %1743 = vmatprep.subr.bf16.mxu0 %v1742_v11 }
 0x13a   : > { %1653 = vmatpush1.bf16.msra.mxu1 %v1652_v16  ;;  %v1744_v16 = vpack.c.bf16 %v1026_v14, %v1024_v13 }
 0x13b   : > { %1655 = vmatprep.subr.bf16.mxu1 %v1654_v19  ;;  %v720_v19 = vld [vmem:[%s2420_s5 + $0x310] sm:$0xff] }
 0x13c   : > { %1745 = vmatpush1.bf16.msra.mxu0 %v1744_v16  ;;  %v1676_v28 = vpack.c.bf16 %v724_v20, %v720_v19  ;;  %v1038_v19 = vld [vmem:[%s2422_s30 + $0x210] sm:$0xff] }
 0x13d   : > { %1747 = vmatprep.subr.bf16.mxu0 %v1746_v25 }
 0x13e   : > { %1657 = vmatpush1.bf16.msra.mxu1 %v1656_v29  ;;  %v1748_v29 = vpack.c.bf16 %v1030_v27, %v1028_v26 }
 0x13f   : > { %1659 = vmatprep.subr.bf16.mxu1 %v1658_v31  ;;  %v728_v31 = vld [vmem:[%s2420_s5 + $0x350] sm:$0xff] }
 0x140   : > { %1749 = vmatpush1.bf16.msra.mxu0 %v1748_v29  ;;  %v1680_v41 = vpack.c.bf16 %v732_v32, %v728_v31  ;;  %v1758_v29 = vpack.c.bf16 %v1043_v22, %v1041_v21  ;;  %v1042_v31 = vld [vmem:[%s2422_s30 + $0x230] sm:$0xff]  ;;  %v1077_v21 = vld [vmem:[%s2422_s30 + $0x348] sm:$0xff]  ;;  %v1079_v22 = vld [vmem:[%s2422_s30 + $0x358] sm:$0xff] }
 0x141   : > { %1751 = vmatprep.subr.bf16.mxu0 %v1750_v38 }
 0x142   : > { %1661 = vmatpush1.bf16.msra.mxu1 %v1660_v42  ;;  %v1752_v42 = vpack.c.bf16 %v1034_v40, %v1032_v39  ;;  %v1762_v39 = vpack.c.bf16 %v1047_v34, %v1045_v33  ;;  %v1044_v40 = vld [vmem:[%s2422_s30 + $0x240] sm:$0xff]  ;;  %v1082_v34 = vld [vmem:[%s2422_s30 + $0x370] sm:$0xff] }
 0x143   : > { %1663 = vmatprep.subr.bf16.mxu1 %v1662_v44  ;;  %v736_v44 = vld [vmem:[%s2420_s5 + $0x390] sm:$0xff]  ;;  %v1080_v33 = vld [vmem:[%s2422_s30 + $0x360] sm:$0xff] }
 0x144   : > { %1753 = vmatpush1.bf16.msra.mxu0 %v1752_v42  ;;  %v1684_v48 = vpack.c.bf16 %v740_v45, %v736_v44  ;;  %v1049_v42 = vld [vmem:[%s2422_s30 + $0x268] sm:$0xff] }
 0x146   : > { %1665 = vmatpush1.bf16.msra.mxu1 %v1664_v54  ;;  %v1039_v54 = vld [vmem:[%s2422_s30 + $0x218] sm:$0xff] }
 0x147   : > { %1667 = vmatprep.subr.bf16.mxu1 %v1666_v56  ;;  %v1754_v55 = vpack.c.bf16 %v1039_v54, %v1037_v53  ;;  %v1054_v53 = vld [vmem:[%s2422_s30 + $0x290] sm:$0xff]  ;;  %v1057_v54 = vld [vmem:[%s2422_s30 + $0x2a8] sm:$0xff] }
 0x149   : > { %1755 = vmatprep.subr.bf16.mxu0 %v1754_v55  ;;  %v1059_v55 = vld [vmem:[%s2422_s30 + $0x2b8] sm:$0xff] }
 0x14a   : > { %1669 = vmatpush1.bf16.msra.mxu1 %v1668_v2 }
 0x14b   : > { %1671 = vmatprep.subr.bf16.mxu1 %v1670_v4 }
 0x14e   : > { %1673 = vmatpush1.bf16.msra.mxu1 %v1672_v15 }
 0x14f   : > { %1675 = vmatprep.subr.bf16.mxu1 %v1674_v17  ;;  %v1036_v17 = vld [vmem:[%s2422_s30 + $0x200] sm:$0xff] }
 0x150   : > { %v1756_v26 = vpack.c.bf16 %v1038_v19, %v1036_v17  ;;  %v1072_v19 = vld [vmem:[%s2422_s30 + $0x320] sm:$0xff] }
 0x152   : > { %1677 = vmatpush1.bf16.msra.mxu1 %v1676_v28 }
 0x153   : > { %1679 = vmatprep.subr.bf16.mxu1 %v1678_v30  ;;  %v1040_v30 = vld [vmem:[%s2422_s30 + $0x220] sm:$0xff] }
 0x154   : > { %v1760_v38 = vpack.c.bf16 %v1042_v31, %v1040_v30  ;;  %v1083_v30 = vld [vmem:[%s2422_s30 + $0x378] sm:$0xff] }
 0x156   : > { %1681 = vmatpush1.bf16.msra.mxu1 %v1680_v41  ;;  %v1046_v41 = vld [vmem:[%s2422_s30 + $0x250] sm:$0xff] }
 0x157   : > { %1683 = vmatprep.subr.bf16.mxu1 %v1682_v43  ;;  %v1051_v43 = vld [vmem:[%s2422_s30 + $0x278] sm:$0xff]  ;;  %v1764_v44 = vpack.c.bf16 %v1046_v41, %v1044_v40  ;;  %v1084_v40 = vld [vmem:[%s2422_s30 + $0x380] sm:$0xff]  ;;  %v1086_v41 = vld [vmem:[%s2422_s30 + $0x390] sm:$0xff] }
 0x158   : > { %v1766_v45 = vpack.c.bf16 %v1051_v43, %v1049_v42  ;;  %v1089_v42 = vld [vmem:[%s2422_s30 + $0x3a8] sm:$0xff]  ;;  %v1091_v43 = vld [vmem:[%s2422_s30 + $0x3b8] sm:$0xff] }
 0x15a   : > { %1685 = vmatpush1.bf16.msra.mxu1 %v1684_v48  ;;  %v1053_v48 = vld [vmem:[%s2422_s30 + $0x288] sm:$0xff] }
 0x15b   : > { %1687 = vmatprep.subr.bf16.mxu1 %v1686_v49  ;;  %v1055_v49 = vld [vmem:[%s2422_s30 + $0x298] sm:$0xff] }
 0x15c   : > { %v1770_v51 = vpack.c.bf16 %v1055_v49, %v1053_v48  ;;  %v1093_v48 = vld [vmem:[%s2422_s30 + $0x3c8] sm:$0xff]  ;;  %v1095_v49 = vld [vmem:[%s2422_s30 + $0x3d8] sm:$0xff] }
 0x15e   : > { %1689 = vmatpush1.bf16.msra.mxu1 %v1688_v52  ;;  %v1052_v52 = vld [vmem:[%s2422_s30 + $0x280] sm:$0xff] }
 0x161   : > { %892 = vmatmul.mubr.f32.vlgmr.msra.gmra.mrb[8].mxu1 %v2561_v63 }
 0x162   : > { %897 = vmatprep.mubr.f32.mxu1 %v2571_v12 }
 0x165   : > { %898 = vmatmul.mubr.f32.gmra.mrb[10].mxu1 %v2576_v18 }
 0x1b4   : > { %v534_v56 = vpop.f32.mrb[0].mxu1 }
 0x1b5   : > { %v904_v57 = vsub.f32 0.0, %v534_v56  ;;  %v536_v35 = vpop.f32.mrb[1].mxu1 }
 0x1b6   : > { %v905_v58 = vsub.f32 0.0, %v536_v35 }
 0x1b7   : > { %v912_v59 = vmul.f32 1.442695, %v904_v57  ;;  %v1774_v57 = vpack.c.bf16 %v1059_v55, %v1057_v54  ;;  %v1097_v54 = vld [vmem:[%s2422_s30 + $0x3e8] sm:$0xff]  ;;  %v1099_v55 = vld [vmem:[%s2422_s30 + $0x3f8] sm:$0xff] }
 0x1b8   : > { %v914_v60 = vmul.f32 1.442695, %v905_v58  ;;  %v540_v61 = vpop.f32.mrb[2].mxu1  ;;  %v1058_v58 = vld [vmem:[%s2422_s30 + $0x2b0] sm:$0xff] }
 0x1b9   : > { %1913 = vpow2.f32 %v912_v59  ;;  %v908_v62 = vsub.f32 0.0, %v540_v61  ;;  %v542_v0 = vpop.f32.mrb[3].mxu1  ;;  %v1061_v59 = vld [vmem:[%s2422_s30 + $0x2c8] sm:$0xff] }
 0x1ba   : > { %1915 = vpow2.f32 %v914_v60  ;;  %v909_v63 = vsub.f32 0.0, %v542_v0  ;;  %v1063_v60 = vld [vmem:[%s2422_s30 + $0x2d8] sm:$0xff] }
 0x1bb   : > { %v920_v1 = vmul.f32 1.442695, %v908_v62  ;;  %v1778_v62 = vpack.c.bf16 %v1063_v60, %v1061_v59  ;;  %v1098_v59 = vld [vmem:[%s2422_s30 + $0x3f0] sm:$0xff] }
 0x1bc   : > { %v922_v12 = vmul.f32 1.442695, %v909_v63  ;;  %v1062_v63 = vld [vmem:[%s2422_s30 + $0x2d0] sm:$0xff] }
 0x1bd   : > { %1917 = vpow2.f32 %v920_v1  ;;  %v1065_v1 = vld [vmem:[%s2422_s30 + $0x2e8] sm:$0xff] }
 0x1be   : > { %1919 = vpow2.f32 %v922_v12  ;;  %v1067_v12 = vld [vmem:[%s2422_s30 + $0x2f8] sm:$0xff] }
 0x1bf   : > { %v816_v18 = vpop.f32.mrb[0].mxu0 }
 0x1c0   : > { %v818_v2 = vpop.f32.mrb[1].mxu0 }
 0x1c3   : > { %v1914_v3 = vpop.eup %1913  ;;  %v822_v4 = vpop.f32.mrb[2].mxu0 }
 0x1c4   : > { %v1916_v5 = vpop.eup %1915  ;;  %v928_v6 = vadd.f32 1.0, %v1914_v3  ;;  %v824_v7 = vpop.f32.mrb[3].mxu0  ;;  %v1064_v3 = vld [vmem:[%s2422_s30 + $0x2e0] sm:$0xff] }
 0x1c5   : > { %v929_v8 = vadd.f32 1.0, %v1916_v5  ;;  %v1069_v5 = vld [vmem:[%s2422_s30 + $0x308] sm:$0xff] }
 0x1c6   : > { %1921 = vrcp.f32 %v928_v6  ;;  %v1071_v6 = vld [vmem:[%s2422_s30 + $0x318] sm:$0xff] }
 0x1c7   : > { %v1918_v9 = vpop.eup %1917  ;;  %1923 = vrcp.f32 %v929_v8  ;;  %v1786_v8 = vpack.c.bf16 %v1071_v6, %v1069_v5 }
 0x1c8   : > { %v1920_v10 = vpop.eup %1919  ;;  %v932_v11 = vadd.f32 1.0, %v1918_v9  ;;  %v1068_v9 = vld [vmem:[%s2422_s30 + $0x300] sm:$0xff] }
 0x1c9   : > { %v933_v13 = vadd.f32 1.0, %v1920_v10  ;;  %v1070_v10 = vld [vmem:[%s2422_s30 + $0x310] sm:$0xff] }
 0x1ca   : > { %1925 = vrcp.f32 %v932_v11  ;;  %v1073_v11 = vld [vmem:[%s2422_s30 + $0x328] sm:$0xff] }
 0x1cb   : > { %1927 = vrcp.f32 %v933_v13  ;;  %v1075_v13 = vld [vmem:[%s2422_s30 + $0x338] sm:$0xff] }
 0x1cc   : > { %v1790_v17 = vpack.c.bf16 %v1075_v13, %v1073_v11 }
 0x1d0   : > { %v1922_v14 = vpop.eup %1921 }
 0x1d1   : > { %v1924_v15 = vpop.eup %1923  ;;  %v952_v16 = vmul.f32 %v1922_v14, %v534_v56  ;;  %v1772_v56 = vpack.c.bf16 %v1054_v53, %v1052_v52  ;;  %v1092_v52 = vld [vmem:[%s2422_s30 + $0x3c0] sm:$0xff]  ;;  %v1094_v53 = vld [vmem:[%s2422_s30 + $0x3d0] sm:$0xff] }
 0x1d2   : > { %v953_v20 = vmul.f32 %v1924_v15, %v536_v35  ;;  %v1056_v35 = vld [vmem:[%s2422_s30 + $0x2a0] sm:$0xff]  ;;  %v1788_v15 = vpack.c.bf16 %v1070_v10, %v1068_v9 }
 0x1d3   : > { %v960_v23 = vmul.f32 %v952_v16, %v816_v18 }
 0x1d4   : > { %v1926_v24 = vpop.eup %1925  ;;  %v961_v25 = vmul.f32 %v953_v20, %v818_v2  ;;  %v1782_v2 = vpack.c.bf16 %v1067_v12, %v1065_v1  ;;  %v1074_v20 = vld [vmem:[%s2422_s30 + $0x330] sm:$0xff] }
 0x1d5   : > { %v1928_v27 = vpop.eup %1927  ;;  %v956_v28 = vmul.f32 %v1926_v24, %v540_v61  ;;  %v1776_v61 = vpack.c.bf16 %v1058_v58, %v1056_v35  ;;  %v1792_v24 = vpack.c.bf16 %v1074_v20, %v1072_v19  ;;  %v1814_v35 = vpack.c.bf16 %v1099_v55, %v1097_v54  ;;  %v1096_v58 = vld [vmem:[%s2422_s30 + $0x3e0] sm:$0xff] }
 0x1d6   : > { %v957_v32 = vmul.f32 %v1928_v27, %v542_v0  ;;  %1164 = vmatprep.mubr.f32.mxu0 %v961_v25  ;;  %v1060_v0 = vld [vmem:[%s2422_s30 + $0x2c0] sm:$0xff] }
 0x1d7   : > { %1165 = vmatmul.mubr.f32.vlgmr.msra.gmra.mrb[4].mxu0 %v960_v23  ;;  %v964_v36 = vmul.f32 %v956_v28, %v822_v4  ;;  %v1780_v18 = vpack.c.bf16 %v1062_v63, %v1060_v0  ;;  %v1066_v4 = vld [vmem:[%s2422_s30 + $0x2f0] sm:$0xff]  ;;  %v1076_v27 = vld [vmem:[%s2422_s30 + $0x340] sm:$0xff] }
 0x1d8   : > { %v965_v37 = vmul.f32 %v957_v32, %v824_v7  ;;  %1757 = vmatpush1.bf16.msra.mxu0 %v1756_v26  ;;  %v1784_v7 = vpack.c.bf16 %v1066_v4, %v1064_v3  ;;  %v1794_v26 = vpack.c.bf16 %v1079_v22, %v1077_v21  ;;  %v1078_v28 = vld [vmem:[%s2422_s30 + $0x350] sm:$0xff] }
 0x1d9   : > { %1759 = vmatprep.subr.bf16.mxu0 %v1758_v29  ;;  %v1081_v29 = vld [vmem:[%s2422_s30 + $0x368] sm:$0xff]  ;;  %v1796_v31 = vpack.c.bf16 %v1078_v28, %v1076_v27 }
 0x1da   : > { %1170 = vmatprep.mubr.f32.mxu0 %v965_v37  ;;  %v1798_v32 = vpack.c.bf16 %v1083_v30, %v1081_v29  ;;  %v1087_v37 = vld [vmem:[%s2422_s30 + $0x398] sm:$0xff] }
 0x1db   : > { %1171 = vmatmul.mubr.f32.gmra.mrb[6].mxu0 %v964_v36  ;;  %v1085_v36 = vld [vmem:[%s2422_s30 + $0x388] sm:$0xff] }
 0x1dc   : > { %1761 = vmatpush1.bf16.msra.mxu0 %v1760_v38  ;;  %v1800_v38 = vpack.c.bf16 %v1082_v34, %v1080_v33 }
 0x1dd   : > { %1763 = vmatprep.subr.bf16.mxu0 %v1762_v39  ;;  %v1802_v39 = vpack.c.bf16 %v1087_v37, %v1085_v36  ;;  %v970_v37 = vld [vmem:[#allocation2 + $0x10] sm:$0xff] }
 0x1e0   : > { %1765 = vmatpush1.bf16.msra.mxu0 %v1764_v44  ;;  %v1804_v44 = vpack.c.bf16 %v1086_v41, %v1084_v40 }
 0x1e1   : > { %1767 = vmatprep.subr.bf16.mxu0 %v1766_v45  ;;  %v1806_v45 = vpack.c.bf16 %v1091_v43, %v1089_v42 }
 0x1e4   : > { %1769 = vmatpush1.bf16.msra.mxu0 %v1768_v50  ;;  %v1808_v50 = vpack.c.bf16 %v1090_v47, %v1088_v46 }
 0x1e5   : > { %1771 = vmatprep.subr.bf16.mxu0 %v1770_v51  ;;  %v1810_v51 = vpack.c.bf16 %v1095_v49, %v1093_v48 }
 0x1e8   : > { %1773 = vmatpush1.bf16.msra.mxu0 %v1772_v56  ;;  %v1812_v56 = vpack.c.bf16 %v1094_v53, %v1092_v52 }
 0x1e9   : > { %1775 = vmatprep.subr.bf16.mxu0 %v1774_v57 }
 0x1ec   : > { %1777 = vmatpush1.bf16.msra.mxu0 %v1776_v61  ;;  %v1816_v61 = vpack.c.bf16 %v1098_v59, %v1096_v58 }
 0x1ed   : > { %1779 = vmatprep.subr.bf16.mxu0 %v1778_v62 }
 0x1f0   : > { %1781 = vmatpush1.bf16.msra.mxu0 %v1780_v18 }
 0x1f1   : > { %1783 = vmatprep.subr.bf16.mxu0 %v1782_v2 }
 0x1f4   : > { %v2811_v14 = vpop.f32.mrb[4].mxu1  ;;  %1785 = vmatpush1.bf16.msra.mxu0 %v1784_v7 }
 0x1f5   : > { %v2813_v16 = vpop.f32.mrb[5].mxu1  ;;  %1787 = vmatprep.subr.bf16.mxu0 %v1786_v8  ;;  %v906_v57 = vsub.f32 0.0, %v2811_v14 }
 0x1f6   : > { %v907_v60 = vsub.f32 0.0, %v2813_v16 }
 0x1f7   : > { %v916_v62 = vmul.f32 1.442695, %v906_v57 }
 0x1f8   : > { %v2819_v23 = vpop.f32.mrb[6].mxu1  ;;  %1789 = vmatpush1.bf16.msra.mxu0 %v1788_v15  ;;  %v918_v63 = vmul.f32 1.442695, %v907_v60 }
 0x1f9   : > { %v2821_v25 = vpop.f32.mrb[7].mxu1  ;;  %1791 = vmatprep.subr.bf16.mxu0 %v1790_v17  ;;  %v910_v0 = vsub.f32 0.0, %v2819_v23  ;;  %1929 = vpow2.f32 %v916_v62 }
 0x1fa   : > { %v911_v1 = vsub.f32 0.0, %v2821_v25  ;;  %1931 = vpow2.f32 %v918_v63 }
 0x1fb   : > { %v924_v12 = vmul.f32 1.442695, %v910_v0 }
 0x1fc   : > { %1793 = vmatpush1.bf16.msra.mxu0 %v1792_v24  ;;  %v926_v18 = vmul.f32 1.442695, %v911_v1 }
 0x1fd   : > { %1795 = vmatprep.subr.bf16.mxu0 %v1794_v26  ;;  %1933 = vpow2.f32 %v924_v12 }
 0x1fe   : > { %1935 = vpow2.f32 %v926_v18 }
 0x200   : > { %1797 = vmatpush1.bf16.msra.mxu0 %v1796_v31 }
 0x201   : > { %1799 = vmatprep.subr.bf16.mxu0 %v1798_v32  ;;  %v969_v32 = vld [vmem:[#allocation2 + $0x8] sm:$0xff] }
 0x203   : > { %v1930_v2 = vpop.eup %1929 }
 0x204   : > { %1801 = vmatpush1.bf16.msra.mxu0 %v1800_v38  ;;  %v1932_v3 = vpop.eup %1931  ;;  %v930_v4 = vadd.f32 1.0, %v1930_v2  ;;  %v971_v38 = vld [vmem:[#allocation2 + $0x18] sm:$0xff] }
 0x205   : > { %1803 = vmatprep.subr.bf16.mxu0 %v1802_v39  ;;  %v931_v6 = vadd.f32 1.0, %v1932_v3 }
 0x206   : > { %1937 = vrcp.f32 %v930_v4 }
 0x207   : > { %v1934_v5 = vpop.eup %1933  ;;  %1939 = vrcp.f32 %v931_v6 }
 0x208   : > { %1805 = vmatpush1.bf16.msra.mxu0 %v1804_v44  ;;  %v1936_v7 = vpop.eup %1935  ;;  %v934_v8 = vadd.f32 1.0, %v1934_v5 }
 0x209   : > { %1807 = vmatprep.subr.bf16.mxu0 %v1806_v45  ;;  %v935_v9 = vadd.f32 1.0, %v1936_v7 }
 0x20a   : > { %1941 = vrcp.f32 %v934_v8 }
 0x20b   : > { %1943 = vrcp.f32 %v935_v9 }
 0x20c   : > { %1809 = vmatpush1.bf16.msra.mxu0 %v1808_v50 }
 0x20d   : > { %1811 = vmatprep.subr.bf16.mxu0 %v1810_v51 }
 0x210   : > { %1813 = vmatpush1.bf16.msra.mxu0 %v1812_v56  ;;  %v1938_v10 = vpop.eup %1937 }
 0x211   : > { %1815 = vmatprep.subr.bf16.mxu0 %v1814_v35  ;;  %v1940_v11 = vpop.eup %1939  ;;  %v954_v13 = vmul.f32 %v1938_v10, %v2811_v14  ;;  %v968_v14 = vld [vmem:[#allocation2] sm:$0xff] }
 0x212   : > { %v955_v17 = vmul.f32 %v1940_v11, %v2813_v16 }
 0x214   : > { %1817 = vmatpush1.bf16.msra.mxu0 %v1816_v61  ;;  %v1942_v15 = vpop.eup %1941 }
 0x215   : > { %v1944_v20 = vpop.eup %1943  ;;  %v958_v26 = vmul.f32 %v1942_v15, %v2819_v23 }
 0x216   : > { %v959_v27 = vmul.f32 %v1944_v20, %v2821_v25 }
 0x234   : > { %v893_v19 = vpop.f32.mrb[8].mxu1 }
 0x235   : > { %v962_v21 = vmul.f32 %v954_v13, %v893_v19  ;;  %v895_v22 = vpop.f32.mrb[9].mxu1 }
 0x236   : > { %v963_v24 = vmul.f32 %v955_v17, %v895_v22 }
 0x238   : > { %v899_v28 = vpop.f32.mrb[10].mxu1  ;;  %1241 = vmatprep.mubr.f32.mxu0 %v963_v24 }
 0x239   : > { %v966_v29 = vmul.f32 %v958_v26, %v899_v28  ;;  %v901_v30 = vpop.f32.mrb[11].mxu1  ;;  %1242 = vmatmul.mubr.f32.vlgmr.msra.gmra.mrb[4].mxu0 %v962_v21 }
 0x23a   : > { %v967_v31 = vmul.f32 %v959_v27, %v901_v30 }
 0x23c   : > { %1247 = vmatprep.mubr.f32.mxu0 %v967_v31 }
 0x23d   : > { %1248 = vmatmul.mubr.f32.gmra.mrb[6].mxu0 %v966_v29 }
 0x30c   : > { %v1243_v16 = vpop.f32.mrb[4].mxu0 }
 0x30d   : > { %v1254_v33 = vadd.f32 %v1243_v16, %v968_v14  ;;  %v1245_v34 = vpop.f32.mrb[5].mxu0 }
 0x30e   : > { %v1255_v36 = vadd.f32 %v1245_v34, %v969_v32  ;;  %1265 = sbr.rel (%p1425_p1) target bundleno = 797 (0x31d), region = 60 }
 0x30f   : > { %1258 = vst [vmem:[#allocation2] sm:$0xff] %v1254_v33 }
 0x310   : > { %1259 = vst [vmem:[#allocation2 + $0x8] sm:$0xff] %v1255_v36  ;;  %v1249_v23 = vpop.f32.mrb[6].mxu0 }
 0x311   : > { %v1256_v25 = vadd.f32 %v1249_v23, %v970_v37  ;;  %v1251_v39 = vpop.f32.mrb[7].mxu0 }
 0x312   : > { %v1257_v40 = vadd.f32 %v1251_v39, %v971_v38 }
 0x313   : > { %1260 = vst [vmem:[#allocation2 + $0x10] sm:$0xff] %v1256_v25 }
 0x314   : > { %1261 = vst [vmem:[#allocation2 + $0x18] sm:$0xff] %v1257_v40 }
 0x316   : > { %v1266_v41 = vld [vmem:[#allocation2] sm:$0xff] }
 0x317   : > { %v1267_v42 = vld [vmem:[#allocation2 + $0x8] sm:$0xff]  ;;  %1270 = vst [vmem:[#allocation11] sm:$0xff] %v1266_v41 }
 0x318   : > { %1271 = vst [vmem:[#allocation11 + $0x8] sm:$0xff] %v1267_v42 }
 0x31a   : > { %v1268_v43 = vld [vmem:[#allocation2 + $0x10] sm:$0xff] }
 0x31b   : > { %1272 = vst [vmem:[#allocation11 + $0x10] sm:$0xff] %v1268_v43  ;;  %v1269_v44 = vld [vmem:[#allocation2 + $0x18] sm:$0xff] }
 0x31c   : > { %1273 = vst [vmem:[#allocation11 + $0x18] sm:$0xff] %v1269_v44 }
 0x31d PF: > { %p1853_p4 = scmp.eq.s32.totalorder %s2296_s24, 1  ;;  %s2163_s29 = smov [#allocation11]  }
 0x31e   : > { %s1284_s25 = sshll.u32 %s2163_s29, 4  ;;  %s1285_s25 = int_to_ptr.vmem [resolvable:$true] %s1284_s25 }
 0x31f   : > { %s2063_s9 = scalar_lea.vmem %s1285_s25, 512  ;;  %p2070_p7 = scmp.lt.s32.totalorder %s1285_s25, %s1285_s25 }
 0x320   : > { %p2064_p2 = scmp.ne.s32.totalorder %s1285_s25, %s2063_s9  ;;  %p2071_p9 = scmp.lt.s32.totalorder %s2063_s9, %s2063_s9 }
 0x322   : > { %p2065_p8 = pnand %p2064_p2, %p1853_p4  ;;  %p2072_p12 = por %p2071_p9, %p2070_p7 }
 0x324   : > { %p2066_p3 = pneg %p2065_p8 }
 0x326   : > { %p2073_p10 = pnand %p2072_p12, %p2066_p3 }
 0x328   : > { %2076 = shalt.err (!%p2073_p10)
}
 0x329   : > { %s2077_s7 = scalar_lea.hbm %s2899_s4, 512 }
 0x32a   : > { %p2078_p6 = scmp.ne.s32.totalorder %s2899_s4, %s2077_s7  ;;  %p2083_p0 = scmp.lt.u32.totalorder %s2077_s7, %s2899_s4 }
 0x32c   : > { %p2079_p11 = pnand %p2078_p6, %p1853_p4 }
 0x32e   : > { %p2080_p5 = pneg %p2079_p11 }
 0x330   : > { %p2085_p13 = pnand %p2083_p0, %p2080_p5 }
 0x332   : > { %2088 = shalt.err (!%p2085_p13)
}
 0x333   : > { %s2164_s26 = smov 256   ;;  %s2165_s12 = smov 16  }
 0x334   : > { %1833 = dma.vmem_to_hbm [thread:$0]  (%p1853_p4), %s1285_s25, 512, %s2899_s4, [#allocation5], %s2164_s26, %s2164_s26, %s2165_s12  }
 0x335   : > { %2126 = dma.done.wait (%p1853_p4), [#allocation5], 512  }
 0x336   : > { %2128 = vsyncadd (%p1853_p4), [#allocation5], 4294966784 }
 0x337 PF: > { %s22_s20 = sadd.s32 1, %s2151_s20   ;;  %s2934_s11 = sld [smem:[#allocation16_spill]] }
 0x338   : > { %p19_p1 = scmp.ge.s32.totalorder %s22_s20, 4   ;;  %s2935_s15 = smov %s2135_s16 }
 0x339   : > { %s2936_s16 = smov %s2139_s17  ;;  %s2937_s17 = smov %s2235_s27 }
 0x33a   : > { %s2938_s18 = smov %s2147_s19  ;;  %21 = sbr.rel (!%p19_p1) target bundleno = 10 (0xa), region = 112 }
 0x33d   : > { %s2939_s19 = smov %s2934_s11 }
 0x341   :  { %1300 = vsyncpa [#allocation4], 1 }
 0x342   :  { %1302 = vsyncpa [#allocation4 + $0x1], 1 }
 0x343   :  { %1303 = vsyncpa [#allocation7], 1 }
 0x344   :  { %1305 = vsyncpa [#allocation7 + $0x1], 1 }
 0x345   :  { %1306 = vsyncpa [#allocation10], 1 }
 0x346   :  { %1308 = vsyncpa [#allocation10 + $0x1], 1 }
 0x347   :  { %1309 = vsyncpa [#allocation5], 1 }
 0x348   :  { %1311 = vsyncpa [#allocation5 + $0x1], 1 }

</bundles_post_ra>
